<compile_context>
chip_gen: v7x
topology: tpu7x:2x2x1
jax: 0.10.0
libtpu: 0.0.40
codegen_flags: <defaults>
</compile_context>

<pallas_src>
import functools

import numpy as np
import jax
import jax.numpy as jnp
from jax import lax
from jax.experimental import pallas as pl
from jax.experimental.pallas import tpu as pltpu


def _round_up(n, m):
    return ((n + m - 1) // m) * m


def _grb_kernel(x_ref, masks_ref, seg_ref, cinv_ref, w1f_ref, wr_ref, coutv_ref,
                w2f_ref, ws1_ref, ws2_ref, out_ref, *, HW, cin, cout, shifts):
    eps = 1e-5
    f32 = jnp.float32
    mxu_dt = w1f_ref.dtype

    x_io = x_ref[...]                     # (cin_p, L)   kernel I/O dtype
    x = x_io.astype(f32)
    masks = masks_ref[...]                # (9, L)       0/1 per-tap edge masks (mxu dtype)
    segT = seg_ref[...]                   # (bseg, L)    0/1 per-sample segment rows (f32)

    cinv = cinv_ref[...]                  # (cin_p, 2)   [g1 | be1]
    g1, be1 = cinv[:, 0:1], cinv[:, 1:2]
    coutv = coutv_ref[...]                # (cout_p, 5)  [b1 | g2 | be2 | b2 | br]
    b1, g2, be2, b2, br = (coutv[:, i:i + 1] for i in range(5))

    dn_lanes = (((1,), (1,)), ((), ()))   # contract the lane axis of both operands

    def gn_swish(v, gamma, beta, n_true):
        # GroupNorm(1, C): per-sample stats over the TRUE channels * HW.  Padded
        # channel rows are zero, so a single pass over the whole padded tile works.
        # Stats stay in f32 (one-pass E[x^2]-mu^2, eps inside rsqrt).
        col = jnp.concatenate([jnp.sum(v, axis=0, keepdims=True),
                               jnp.sum(v * v, axis=0, keepdims=True)], axis=0)   # (2, L)
        seg = lax.dot_general(col, segT, dn_lanes, preferred_element_type=f32)   # (2, bseg)
        mu = seg[0:1] / n_true
        var = seg[1:2] / n_true - mu * mu
        rows = jnp.dot(jnp.concatenate([mu, lax.rsqrt(var + eps)], axis=0), segT,
                       preferred_element_type=f32)                               # (2, L)
        vn = (v - rows[0:1]) * rows[1:2] * gamma + beta
        return vn * jax.nn.sigmoid(vn)

    def im2col(a):
        # 9 shifted + edge-masked copies stacked along sublanes -> one MXU matmul.
        # Cast to the MXU dtype BEFORE roll/mask/concat (halves XLU/VPU/VMEM traffic).
        # TODO(synk): at production channel counts (C >= ~64) switch to a per-tap
        #             matmul-accumulate loop instead of materializing the 9x stack.
        am = a.astype(mxu_dt)
        taps = []
        for t, sh in enumerate(shifts):
            src = am if sh == 0 else pltpu.roll(am, sh, axis=1)
            if t != 4:                    # center tap has an all-ones mask
                src = src * masks[t:t + 1, :]
            taps.append(src)
        return jnp.concatenate(taps, axis=0)

    # ---- block1: GN -> Swish -> conv3x3; residual 1x1 as its own small matmul ----
    a1 = gn_swish(x, g1, be1, cin * HW)
    h = jnp.dot(w1f_ref[...], im2col(a1), preferred_element_type=f32) + b1
    res = jnp.dot(wr_ref[...], x_io.astype(mxu_dt), preferred_element_type=f32) + br

    # ---- block2: GN -> Swish -> Dropout(identity) -> conv3x3 ----
    # TODO(synk): train-mode stochastic dropout (pltpu.prng_*) not implemented;
    #             the module default dropout=0 makes it an Identity.
    a2 = gn_swish(h, g2, be2, cout * HW)
    h2 = jnp.dot(w2f_ref[...], im2col(a2), preferred_element_type=f32) + b2

    # ---- SE: per-sample avg pool -> FC -> ReLU -> FC -> Sigmoid -> scale (all MXU) ----
    y = lax.dot_general(h2, segT, dn_lanes, preferred_element_type=f32) * (1.0 / HW)  # (cout_p, bseg)
    z = jnp.maximum(jnp.dot(ws1_ref[...], y, preferred_element_type=f32), 0.0)
    s = jax.nn.sigmoid(jnp.dot(ws2_ref[...], z, preferred_element_type=f32))
    scale = jnp.dot(s, segT, preferred_element_type=f32)                              # (cout_p, L)

    out_ref[...] = (h2 * scale + res).astype(out_ref.dtype)


def _pick_bblk(B, HW, cin_p, cout_p, *, io_size, mxu_size,
               lane_target=2048, vmem_budget=40 << 20):
    """Samples folded per grid step.  Honors: (a) >= lane_target lanes per step when B
    allows (amortize per-step overhead, v6e HBM roofline), (b) >= 2 grid steps so both
    v7x TensorCores get work, (c) the per-step VMEM working set, (d) 128-lane blocks."""
    def workset(bb):
        L = bb * HW
        return (2 * (cin_p + cout_p) * L * io_size          # double-buffered in/out blocks
                + (9 * mxu_size + max(bb, 8) * 4) * L        # edge masks + segment matrix
                + 9 * (cin_p + cout_p) * L * mxu_size        # im2col stacks
                + 6 * cout_p * L * 4)                        # f32 activation temporaries

    bblk = max(1, min(B, lane_target // max(HW, 1)))
    if B >= 2:
        bblk = min(bblk, (B + 1) // 2)                       # keep >= 2 grid steps
    while bblk > 1 and workset(bblk) > vmem_budget:
        bblk -= 1
    if (bblk * HW) % 128 != 0:
        # Fall back to one full-extent, lane-dense block (block == full array dim).
        # TODO(synk): production H,W should HW-tile with a 1-row halo instead.
        bblk = B
    return bblk


def guidance_res_block_pallas(x_nchw, p, *, mxu_dtype=jnp.bfloat16, io_dtype=None,
                              bblk=None, lane_target=2048, vmem_limit_bytes=48 << 20):
    B, Cin, H, W = x_nchw.shape
    Cout = p['w1'].shape[0]
    mid = p['ws1'].shape[0]
    HW = H * W
    cin_p = _round_up(Cin, 8)
    cout_p = _round_up(Cout, 8)
    f32 = jnp.float32

    if io_dtype is None:
        io_dtype = f32 if jnp.dtype(mxu_dtype) == jnp.dtype(f32) else jnp.bfloat16
    if bblk is None:
        bblk = _pick_bblk(B, HW, cin_p, cout_p,
                          io_size=jnp.dtype(io_dtype).itemsize,
                          mxu_size=jnp.dtype(mxu_dtype).itemsize,
                          lane_target=lane_target,
                          vmem_budget=int(0.8 * vmem_limit_bytes))
    b_pad = _round_up(B, bblk)
    L = bblk * HW

    # ---- input: NCHW -> channel-major folded (cin_p, b_pad*HW) in the kernel I/O dtype ----
    # TODO(synk): in a full model, produce/consume this layout directly in the
    #             neighbouring ops instead of an extra relayout round-trip here.
    x2 = jnp.pad(x_nchw.astype(f32), ((0, b_pad - B), (0, cin_p - Cin), (0, 0), (0, 0)))
    xf = jnp.transpose(x2, (1, 0, 2, 3)).reshape(cin_p, b_pad * HW).astype(io_dtype)

    # ---- static 3x3 edge masks (per destination pixel) + lane-roll shifts ----
    pidx = np.arange(HW)
    row, col = pidx // W, pidx % W
    mrows, shifts = [], []
    for dy in (-1, 0, 1):
        for dx in (-1, 0, 1):
            valid = (row + dy >= 0) & (row + dy < H) & (col + dx >= 0) & (col + dx < W)
            mrows.append(valid.astype(np.float32))
            shifts.append((-(dy * W + dx)) % L)   # rolled[p] = a[(p + dy*W + dx) % L]
    masks = jnp.asarray(np.tile(np.stack(mrows, 0), (1, bblk))).astype(mxu_dtype)   # (9, L)

    # ---- 0/1 per-sample segment matrix; padded to >=8 rows for layout friendliness ----
    bseg = _round_up(bblk, 8)
    seg_np = np.zeros((bseg, L), np.float32)
    for b in range(bblk):
        seg_np[b, b * HW:(b + 1) * HW] = 1.0
    segT = jnp.asarray(seg_np)                                                       # (bseg, L)

    # ---- conv weights, flattened for the im2col matmuls ----
    w1p = jnp.pad(p['w1'], ((0, cout_p - Cout), (0, cin_p - Cin), (0, 0), (0, 0)))
    w1f = jnp.transpose(w1p, (0, 2, 3, 1)).reshape(cout_p, 9 * cin_p).astype(mxu_dtype)
    w2p = jnp.pad(p['w2'], ((0, cout_p - Cout), (0, cout_p - Cout), (0, 0), (0, 0)))
    w2f = jnp.transpose(w2p, (0, 2, 3, 1)).reshape(cout_p, 9 * cout_p).astype(mxu_dtype)

    if 'wr' in p:                                  # dim != dim_out: 1x1 residual conv
        wr_, br_ = p['wr'][:, :, 0, 0], p['br']
    else:                                          # dim == dim_out: Identity residual
        wr_, br_ = jnp.eye(Cout, Cin, dtype=f32), jnp.zeros((Cout,), f32)
    wr = jnp.pad(wr_.astype(f32), ((0, cout_p - Cout), (0, cin_p - Cin))).astype(mxu_dtype)

    # ---- per-channel vectors packed into two small tiles ----
    def padv(v, n):
        return jnp.pad(v.astype(f32), (0, n - v.shape[0]))
    cin_vecs = jnp.stack([padv(p['g1'], cin_p), padv(p['be1'], cin_p)], axis=1)       # (cin_p, 2)
    cout_vecs = jnp.stack([padv(p['b1'], cout_p), padv(p['g2'], cout_p),
                           padv(p['be2'], cout_p), padv(p['b2'], cout_p),
                           padv(br_, cout_p)], axis=1)                                # (cout_p, 5)

    # ---- SE weights (f32) ----
    ws1 = jnp.pad(p['ws1'].astype(f32), ((0, 0), (0, cout_p - Cout)))                 # (mid, cout_p)
    ws2 = jnp.pad(p['ws2'].astype(f32), ((0, cout_p - Cout), (0, 0)))                 # (cout_p, mid)

    kernel = functools.partial(_grb_kernel, HW=HW, cin=Cin, cout=Cout, shifts=tuple(shifts))

    def full(shape):
        n = len(shape)
        return pl.BlockSpec(shape, lambda b, n=n: (0,) * n)

    out = pl.pallas_call(
        kernel,
        out_shape=jax.ShapeDtypeStruct((cout_p, b_pad * HW), io_dtype),
        grid_spec=pltpu.PrefetchScalarGridSpec(
            num_scalar_prefetch=0,
            grid=(b_pad // bblk,),
            in_specs=[
                pl.BlockSpec((cin_p, L), lambda b: (0, b)),   # x block for this grid step
                full((9, L)),                                 # edge masks (constant block)
                full((bseg, L)),                              # segment matrix
                full((cin_p, 2)),                             # [g1 | be1]
                full((cout_p, 9 * cin_p)),                    # conv1 weights
                full((cout_p, cin_p)),                        # residual 1x1 weights
                full((cout_p, 5)),                            # [b1 | g2 | be2 | b2 | br]
                full((cout_p, 9 * cout_p)),                   # conv2 weights
                full((mid, cout_p)),                          # SE fc1
                full((cout_p, mid)),                          # SE fc2
            ],
            out_specs=pl.BlockSpec((cout_p, L), lambda b: (0, b)),
        ),
        compiler_params=pltpu.CompilerParams(
            dimension_semantics=("parallel",),
            vmem_limit_bytes=int(vmem_limit_bytes)),
    )(xf, masks, segT, cin_vecs, w1f, wr, cout_vecs, w2f, ws1, ws2)

    out = out.astype(f32).reshape(cout_p, b_pad, H, W)[:Cout, :B]
    return jnp.transpose(out, (1, 0, 2, 3)).astype(x_nchw.dtype)


def guidance_res_block_ref(x, p):
    # pure-JAX reference (NCHW), mirroring the PyTorch module semantics
    eps = 1e-5
    dn = ('NCHW', 'OIHW', 'NCHW')

    def gnorm(v, g, b):
        mu = v.mean(axis=(1, 2, 3), keepdims=True)
        var = jnp.square(v - mu).mean(axis=(1, 2, 3), keepdims=True)
        return (v - mu) * lax.rsqrt(var + eps) * g[None, :, None, None] + b[None, :, None, None]

    def swish(v):
        return v * jax.nn.sigmoid(v)

    def conv(v, w, b, pad):
        o = lax.conv_general_dilated(v, w, (1, 1), [(pad, pad), (pad, pad)],
                                     dimension_numbers=dn)
        return o + b[None, :, None, None]

    h = conv(swish(gnorm(x, p['g1'], p['be1'])), p['w1'], p['b1'], 1)
    h = conv(swish(gnorm(h, p['g2'], p['be2'])), p['w2'], p['b2'], 1)
    res = conv(x, p['wr'], p['br'], 0)
    y = h.mean(axis=(2, 3))                                # (B, Cout)
    z = jnp.maximum(y @ p['ws1'].T, 0.0)                   # (B, mid)
    s = jax.nn.sigmoid(z @ p['ws2'].T)                     # (B, Cout)
    return h * s[:, :, None, None] + res


def init_params(key, dim, dim_out, reduction=8):
    mid = dim_out // reduction
    ks = jax.random.split(key, 12)
    f32 = jnp.float32
    return {
        'g1': 1.0 + 0.05 * jax.random.normal(ks[0], (dim,), f32),
        'be1': 0.05 * jax.random.normal(ks[1], (dim,), f32),
        'w1': 0.2 * jax.random.normal(ks[2], (dim_out, dim, 3, 3), f32),
        'b1': 0.05 * jax.random.normal(ks[3], (dim_out,), f32),
        'g2': 1.0 + 0.05 * jax.random.normal(ks[4], (dim_out,), f32),
        'be2': 0.05 * jax.random.normal(ks[5], (dim_out,), f32),
        'w2': 0.2 * jax.random.normal(ks[6], (dim_out, dim_out, 3, 3), f32),
        'b2': 0.05 * jax.random.normal(ks[7], (dim_out,), f32),
        'wr': 0.2 * jax.random.normal(ks[8], (dim_out, dim, 1, 1), f32),
        'br': 0.05 * jax.random.normal(ks[9], (dim_out,), f32),
        'ws1': 0.3 * jax.random.normal(ks[10], (mid, dim_out), f32),   # Linear(dim_out -> mid), no bias
        'ws2': 0.3 * jax.random.normal(ks[11], (dim_out, mid), f32),   # Linear(mid -> dim_out), no bias
    }


if __name__ == "__main__":
    B, dim, dim_out, H, W = 2, 4, 16, 16, 16
    key = jax.random.PRNGKey(0)
    kx, kp = jax.random.split(key)
    x = jax.random.normal(kx, (B, dim, H, W), jnp.float32)
    params = init_params(kp, dim, dim_out)

    ref = guidance_res_block_ref(x, params)

    # exact-math path (f32 MXU operands + f32 I/O): tight check of the kernel semantics
    out_f32 = jax.block_until_ready(
        guidance_res_block_pallas(x, params, mxu_dtype=jnp.float32))
    np.testing.assert_allclose(np.asarray(out_f32), np.asarray(ref), rtol=5e-3, atol=5e-3)

    # fast path (bf16 MXU operands + bf16 I/O, f32 accumulation & elementwise math)
    out_bf16 = jax.block_until_ready(guidance_res_block_pallas(x, params))
    np.testing.assert_allclose(np.asarray(out_bf16), np.asarray(ref), rtol=3e-2, atol=3e-2)

    print("KERNEL_OK")
</pallas_src>

<mosaic_0001>
module attributes {stable_mosaic.version = 11 : i64} {
  func.func @_grb_kernel(%arg0: i32, %arg1: memref<8x256xf32, #tpu.memory_space<vmem>>, %arg2: memref<9x256xf32, #tpu.memory_space<vmem>>, %arg3: memref<8x256xf32, #tpu.memory_space<vmem>>, %arg4: memref<8x2xf32, #tpu.memory_space<vmem>>, %arg5: memref<16x72xf32, #tpu.memory_space<vmem>>, %arg6: memref<16x8xf32, #tpu.memory_space<vmem>>, %arg7: memref<16x5xf32, #tpu.memory_space<vmem>>, %arg8: memref<16x144xf32, #tpu.memory_space<vmem>>, %arg9: memref<2x16xf32, #tpu.memory_space<vmem>>, %arg10: memref<16x2xf32, #tpu.memory_space<vmem>>, %arg11: memref<16x256xf32, #tpu.memory_space<vmem>>) attributes {dimension_semantics = [#tpu.dimension_semantics<parallel>], iteration_bounds = array<i64: 2>, scalar_prefetch = 0 : i64, scratch_operands = 0 : i64, tpu.core_type = #tpu.core_type<tc>, window_params = [{transform_indices = @transform_0, window_bounds = array<i64: 8, 256>}, {pipeline_mode = #tpu.pipeline_mode<synchronous>, transform_indices = @transform_1, window_bounds = array<i64: 9, 256>}, {pipeline_mode = #tpu.pipeline_mode<synchronous>, transform_indices = @transform_2, window_bounds = array<i64: 8, 256>}, {pipeline_mode = #tpu.pipeline_mode<synchronous>, transform_indices = @transform_3, window_bounds = array<i64: 8, 2>}, {pipeline_mode = #tpu.pipeline_mode<synchronous>, transform_indices = @transform_4, window_bounds = array<i64: 16, 72>}, {pipeline_mode = #tpu.pipeline_mode<synchronous>, transform_indices = @transform_5, window_bounds = array<i64: 16, 8>}, {pipeline_mode = #tpu.pipeline_mode<synchronous>, transform_indices = @transform_6, window_bounds = array<i64: 16, 5>}, {pipeline_mode = #tpu.pipeline_mode<synchronous>, transform_indices = @transform_7, window_bounds = array<i64: 16, 144>}, {pipeline_mode = #tpu.pipeline_mode<synchronous>, transform_indices = @transform_8, window_bounds = array<i64: 2, 16>}, {pipeline_mode = #tpu.pipeline_mode<synchronous>, transform_indices = @transform_9, window_bounds = array<i64: 16, 2>}, {transform_indices = @transform_10, window_bounds = array<i64: 16, 256>}]} {
    %c0 = arith.constant 0 : index
    %c0_0 = arith.constant 0 : index
    %0 = vector.load %arg1[%c0, %c0_0] : memref<8x256xf32, #tpu.memory_space<vmem>>, vector<8x256xf32>
    %c0_1 = arith.constant 0 : index
    %c0_2 = arith.constant 0 : index
    %1 = vector.load %arg2[%c0_1, %c0_2] : memref<9x256xf32, #tpu.memory_space<vmem>>, vector<9x256xf32>
    %c0_3 = arith.constant 0 : index
    %c0_4 = arith.constant 0 : index
    %2 = vector.load %arg3[%c0_3, %c0_4] : memref<8x256xf32, #tpu.memory_space<vmem>>, vector<8x256xf32>
    %c0_5 = arith.constant 0 : index
    %c0_6 = arith.constant 0 : index
    %3 = vector.load %arg4[%c0_5, %c0_6] : memref<8x2xf32, #tpu.memory_space<vmem>>, vector<8x2xf32>
    %4 = vector.extract_strided_slice %3 {offsets = [0, 0], sizes = [8, 1], strides = [1, 1]} : vector<8x2xf32> to vector<8x1xf32>
    %5 = vector.extract_strided_slice %3 {offsets = [0, 1], sizes = [8, 1], strides = [1, 1]} : vector<8x2xf32> to vector<8x1xf32>
    %c0_7 = arith.constant 0 : index
    %c0_8 = arith.constant 0 : index
    %6 = vector.load %arg7[%c0_7, %c0_8] : memref<16x5xf32, #tpu.memory_space<vmem>>, vector<16x5xf32>
    %7 = vector.extract_strided_slice %6 {offsets = [0, 0], sizes = [16, 1], strides = [1, 1]} : vector<16x5xf32> to vector<16x1xf32>
    %8 = vector.extract_strided_slice %6 {offsets = [0, 1], sizes = [16, 1], strides = [1, 1]} : vector<16x5xf32> to vector<16x1xf32>
    %9 = vector.extract_strided_slice %6 {offsets = [0, 2], sizes = [16, 1], strides = [1, 1]} : vector<16x5xf32> to vector<16x1xf32>
    %10 = vector.extract_strided_slice %6 {offsets = [0, 3], sizes = [16, 1], strides = [1, 1]} : vector<16x5xf32> to vector<16x1xf32>
    %11 = vector.extract_strided_slice %6 {offsets = [0, 4], sizes = [16, 1], strides = [1, 1]} : vector<16x5xf32> to vector<16x1xf32>
    %cst = arith.constant dense<0.000000e+00> : vector<256xf32>
    %12 = vector.multi_reduction <add>, %0, %cst [0] : vector<8x256xf32> to vector<256xf32>
    %13 = vector.shape_cast %12 : vector<256xf32> to vector<1x256xf32>
    %14 = arith.mulf %0, %0 : vector<8x256xf32>
    %cst_9 = arith.constant dense<0.000000e+00> : vector<256xf32>
    %15 = vector.multi_reduction <add>, %14, %cst_9 [0] : vector<8x256xf32> to vector<256xf32>
    %16 = vector.shape_cast %15 : vector<256xf32> to vector<1x256xf32>
    %17 = tpu.concatenate %13, %16 in 0 : vector<1x256xf32>, vector<1x256xf32> -> vector<2x256xf32>
    %cst_10 = arith.constant dense<0.000000e+00> : vector<2x8xf32>
    %18 = tpu.matmul %17, %2, %cst_10 {dimension_numbers = #tpu.dot_dimension_numbers<[1], [1], [0], [0], [0, 0, 1, 0], [], []>} : vector<2x256xf32>, vector<8x256xf32>, vector<2x8xf32> -> vector<2x8xf32>
    %19 = vector.extract_strided_slice %18 {offsets = [0, 0], sizes = [1, 8], strides = [1, 1]} : vector<2x8xf32> to vector<1x8xf32>
    %cst_11 = arith.constant 1.024000e+03 : f32
    %20 = vector.broadcast %cst_11 : f32 to vector<1x8xf32>
    %21 = arith.divf %19, %20 : vector<1x8xf32>
    %22 = vector.extract_strided_slice %18 {offsets = [1, 0], sizes = [1, 8], strides = [1, 1]} : vector<2x8xf32> to vector<1x8xf32>
    %cst_12 = arith.constant 1.024000e+03 : f32
    %23 = vector.broadcast %cst_12 : f32 to vector<1x8xf32>
    %24 = arith.divf %22, %23 : vector<1x8xf32>
    %25 = arith.mulf %21, %21 : vector<1x8xf32>
    %26 = arith.subf %24, %25 : vector<1x8xf32>
    %cst_13 = arith.constant 9.99999974E-6 : f32
    %27 = vector.broadcast %cst_13 : f32 to vector<1x8xf32>
    %28 = arith.addf %26, %27 : vector<1x8xf32>
    %29 = math.rsqrt %28 : vector<1x8xf32>
    %30 = tpu.concatenate %21, %29 in 0 : vector<1x8xf32>, vector<1x8xf32> -> vector<2x8xf32>
    %cst_14 = arith.constant dense<0.000000e+00> : vector<2x256xf32>
    %31 = tpu.matmul %30, %2, %cst_14 {dimension_numbers = #tpu.dot_dimension_numbers<[1], [0], [0], [1], [0, 0, 1, 1], [], []>} : vector<2x8xf32>, vector<8x256xf32>, vector<2x256xf32> -> vector<2x256xf32>
    %32 = vector.extract_strided_slice %31 {offsets = [0, 0], sizes = [1, 256], strides = [1, 1]} : vector<2x256xf32> to vector<1x256xf32>
    %33 = vector.broadcast %32 : vector<1x256xf32> to vector<8x256xf32>
    %34 = arith.subf %0, %33 : vector<8x256xf32>
    %35 = vector.extract_strided_slice %31 {offsets = [1, 0], sizes = [1, 256], strides = [1, 1]} : vector<2x256xf32> to vector<1x256xf32>
    %36 = vector.broadcast %35 : vector<1x256xf32> to vector<8x256xf32>
    %37 = arith.mulf %34, %36 : vector<8x256xf32>
    %38 = vector.broadcast %4 : vector<8x1xf32> to vector<8x256xf32>
    %39 = arith.mulf %37, %38 : vector<8x256xf32>
    %40 = vector.broadcast %5 : vector<8x1xf32> to vector<8x256xf32>
    %41 = arith.addf %39, %40 : vector<8x256xf32>
    %42 = arith.negf %41 : vector<8x256xf32>
    %43 = math.exp %42 : vector<8x256xf32>
    %cst_15 = arith.constant 1.000000e+00 : f32
    %44 = vector.broadcast %cst_15 : f32 to vector<8x256xf32>
    %45 = arith.addf %44, %43 : vector<8x256xf32>
    %46 = arith.divf %44, %45 : vector<8x256xf32>
    %47 = arith.mulf %41, %46 : vector<8x256xf32>
    %c0_16 = arith.constant 0 : index
    %c0_17 = arith.constant 0 : index
    %48 = vector.load %arg5[%c0_16, %c0_17] : memref<16x72xf32, #tpu.memory_space<vmem>>, vector<16x72xf32>
    %c17_i32 = arith.constant 17 : i32
    %49 = tpu.dynamic_rotate %47 by %c17_i32 dim 1 : vector<8x256xf32>, i32 -> vector<8x256xf32>
    %50 = vector.extract_strided_slice %1 {offsets = [0, 0], sizes = [1, 256], strides = [1, 1]} : vector<9x256xf32> to vector<1x256xf32>
    %51 = vector.broadcast %50 : vector<1x256xf32> to vector<8x256xf32>
    %52 = arith.mulf %49, %51 : vector<8x256xf32>
    %c16_i32 = arith.constant 16 : i32
    %53 = tpu.dynamic_rotate %47 by %c16_i32 dim 1 : vector<8x256xf32>, i32 -> vector<8x256xf32>
    %54 = vector.extract_strided_slice %1 {offsets = [1, 0], sizes = [1, 256], strides = [1, 1]} : vector<9x256xf32> to vector<1x256xf32>
    %55 = vector.broadcast %54 : vector<1x256xf32> to vector<8x256xf32>
    %56 = arith.mulf %53, %55 : vector<8x256xf32>
    %c15_i32 = arith.constant 15 : i32
    %57 = tpu.dynamic_rotate %47 by %c15_i32 dim 1 : vector<8x256xf32>, i32 -> vector<8x256xf32>
    %58 = vector.extract_strided_slice %1 {offsets = [2, 0], sizes = [1, 256], strides = [1, 1]} : vector<9x256xf32> to vector<1x256xf32>
    %59 = vector.broadcast %58 : vector<1x256xf32> to vector<8x256xf32>
    %60 = arith.mulf %57, %59 : vector<8x256xf32>
    %c1_i32 = arith.constant 1 : i32
    %61 = tpu.dynamic_rotate %47 by %c1_i32 dim 1 : vector<8x256xf32>, i32 -> vector<8x256xf32>
    %62 = vector.extract_strided_slice %1 {offsets = [3, 0], sizes = [1, 256], strides = [1, 1]} : vector<9x256xf32> to vector<1x256xf32>
    %63 = vector.broadcast %62 : vector<1x256xf32> to vector<8x256xf32>
    %64 = arith.mulf %61, %63 : vector<8x256xf32>
    %c255_i32 = arith.constant 255 : i32
    %65 = tpu.dynamic_rotate %47 by %c255_i32 dim 1 : vector<8x256xf32>, i32 -> vector<8x256xf32>
    %66 = vector.extract_strided_slice %1 {offsets = [5, 0], sizes = [1, 256], strides = [1, 1]} : vector<9x256xf32> to vector<1x256xf32>
    %67 = vector.broadcast %66 : vector<1x256xf32> to vector<8x256xf32>
    %68 = arith.mulf %65, %67 : vector<8x256xf32>
    %c241_i32 = arith.constant 241 : i32
    %69 = tpu.dynamic_rotate %47 by %c241_i32 dim 1 : vector<8x256xf32>, i32 -> vector<8x256xf32>
    %70 = vector.extract_strided_slice %1 {offsets = [6, 0], sizes = [1, 256], strides = [1, 1]} : vector<9x256xf32> to vector<1x256xf32>
    %71 = vector.broadcast %70 : vector<1x256xf32> to vector<8x256xf32>
    %72 = arith.mulf %69, %71 : vector<8x256xf32>
    %c240_i32 = arith.constant 240 : i32
    %73 = tpu.dynamic_rotate %47 by %c240_i32 dim 1 : vector<8x256xf32>, i32 -> vector<8x256xf32>
    %74 = vector.extract_strided_slice %1 {offsets = [7, 0], sizes = [1, 256], strides = [1, 1]} : vector<9x256xf32> to vector<1x256xf32>
    %75 = vector.broadcast %74 : vector<1x256xf32> to vector<8x256xf32>
    %76 = arith.mulf %73, %75 : vector<8x256xf32>
    %c239_i32 = arith.constant 239 : i32
    %77 = tpu.dynamic_rotate %47 by %c239_i32 dim 1 : vector<8x256xf32>, i32 -> vector<8x256xf32>
    %78 = vector.extract_strided_slice %1 {offsets = [8, 0], sizes = [1, 256], strides = [1, 1]} : vector<9x256xf32> to vector<1x256xf32>
    %79 = vector.broadcast %78 : vector<1x256xf32> to vector<8x256xf32>
    %80 = arith.mulf %77, %79 : vector<8x256xf32>
    %81 = tpu.concatenate %52, %56, %60, %64, %47, %68, %72, %76, %80 in 0 : vector<8x256xf32>, vector<8x256xf32>, vector<8x256xf32>, vector<8x256xf32>, vector<8x256xf32>, vector<8x256xf32>, vector<8x256xf32>, vector<8x256xf32>, vector<8x256xf32> -> vector<72x256xf32>
    %cst_18 = arith.constant dense<0.000000e+00> : vector<16x256xf32>
    %82 = tpu.matmul %48, %81, %cst_18 {dimension_numbers = #tpu.dot_dimension_numbers<[1], [0], [0], [1], [0, 0, 1, 1], [], []>} : vector<16x72xf32>, vector<72x256xf32>, vector<16x256xf32> -> vector<16x256xf32>
    %83 = vector.broadcast %7 : vector<16x1xf32> to vector<16x256xf32>
    %84 = arith.addf %82, %83 : vector<16x256xf32>
    %c0_19 = arith.constant 0 : index
    %c0_20 = arith.constant 0 : index
    %85 = vector.load %arg6[%c0_19, %c0_20] : memref<16x8xf32, #tpu.memory_space<vmem>>, vector<16x8xf32>
    %cst_21 = arith.constant dense<0.000000e+00> : vector<16x256xf32>
    %86 = tpu.matmul %85, %0, %cst_21 {dimension_numbers = #tpu.dot_dimension_numbers<[1], [0], [0], [1], [0, 0, 1, 1], [], []>} : vector<16x8xf32>, vector<8x256xf32>, vector<16x256xf32> -> vector<16x256xf32>
    %87 = vector.broadcast %11 : vector<16x1xf32> to vector<16x256xf32>
    %88 = arith.addf %86, %87 : vector<16x256xf32>
    %cst_22 = arith.constant dense<0.000000e+00> : vector<256xf32>
    %89 = vector.multi_reduction <add>, %84, %cst_22 [0] : vector<16x256xf32> to vector<256xf32>
    %90 = vector.shape_cast %89 : vector<256xf32> to vector<1x256xf32>
    %91 = arith.mulf %84, %84 : vector<16x256xf32>
    %cst_23 = arith.constant dense<0.000000e+00> : vector<256xf32>
    %92 = vector.multi_reduction <add>, %91, %cst_23 [0] : vector<16x256xf32> to vector<256xf32>
    %93 = vector.shape_cast %92 : vector<256xf32> to vector<1x256xf32>
    %94 = tpu.concatenate %90, %93 in 0 : vector<1x256xf32>, vector<1x256xf32> -> vector<2x256xf32>
    %cst_24 = arith.constant dense<0.000000e+00> : vector<2x8xf32>
    %95 = tpu.matmul %94, %2, %cst_24 {dimension_numbers = #tpu.dot_dimension_numbers<[1], [1], [0], [0], [0, 0, 1, 0], [], []>} : vector<2x256xf32>, vector<8x256xf32>, vector<2x8xf32> -> vector<2x8xf32>
    %96 = vector.extract_strided_slice %95 {offsets = [0, 0], sizes = [1, 8], strides = [1, 1]} : vector<2x8xf32> to vector<1x8xf32>
    %cst_25 = arith.constant 4.096000e+03 : f32
    %97 = vector.broadcast %cst_25 : f32 to vector<1x8xf32>
    %98 = arith.divf %96, %97 : vector<1x8xf32>
    %99 = vector.extract_strided_slice %95 {offsets = [1, 0], sizes = [1, 8], strides = [1, 1]} : vector<2x8xf32> to vector<1x8xf32>
    %cst_26 = arith.constant 4.096000e+03 : f32
    %100 = vector.broadcast %cst_26 : f32 to vector<1x8xf32>
    %101 = arith.divf %99, %100 : vector<1x8xf32>
    %102 = arith.mulf %98, %98 : vector<1x8xf32>
    %103 = arith.subf %101, %102 : vector<1x8xf32>
    %cst_27 = arith.constant 9.99999974E-6 : f32
    %104 = vector.broadcast %cst_27 : f32 to vector<1x8xf32>
    %105 = arith.addf %103, %104 : vector<1x8xf32>
    %106 = math.rsqrt %105 : vector<1x8xf32>
    %107 = tpu.concatenate %98, %106 in 0 : vector<1x8xf32>, vector<1x8xf32> -> vector<2x8xf32>
    %cst_28 = arith.constant dense<0.000000e+00> : vector<2x256xf32>
    %108 = tpu.matmul %107, %2, %cst_28 {dimension_numbers = #tpu.dot_dimension_numbers<[1], [0], [0], [1], [0, 0, 1, 1], [], []>} : vector<2x8xf32>, vector<8x256xf32>, vector<2x256xf32> -> vector<2x256xf32>
    %109 = vector.extract_strided_slice %108 {offsets = [0, 0], sizes = [1, 256], strides = [1, 1]} : vector<2x256xf32> to vector<1x256xf32>
    %110 = vector.broadcast %109 : vector<1x256xf32> to vector<16x256xf32>
    %111 = arith.subf %84, %110 : vector<16x256xf32>
    %112 = vector.extract_strided_slice %108 {offsets = [1, 0], sizes = [1, 256], strides = [1, 1]} : vector<2x256xf32> to vector<1x256xf32>
    %113 = vector.broadcast %112 : vector<1x256xf32> to vector<16x256xf32>
    %114 = arith.mulf %111, %113 : vector<16x256xf32>
    %115 = vector.broadcast %8 : vector<16x1xf32> to vector<16x256xf32>
    %116 = arith.mulf %114, %115 : vector<16x256xf32>
    %117 = vector.broadcast %9 : vector<16x1xf32> to vector<16x256xf32>
    %118 = arith.addf %116, %117 : vector<16x256xf32>
    %119 = arith.negf %118 : vector<16x256xf32>
    %120 = math.exp %119 : vector<16x256xf32>
    %cst_29 = arith.constant 1.000000e+00 : f32
    %121 = vector.broadcast %cst_29 : f32 to vector<16x256xf32>
    %122 = arith.addf %121, %120 : vector<16x256xf32>
    %123 = arith.divf %121, %122 : vector<16x256xf32>
    %124 = arith.mulf %118, %123 : vector<16x256xf32>
    %c0_30 = arith.constant 0 : index
    %c0_31 = arith.constant 0 : index
    %125 = vector.load %arg8[%c0_30, %c0_31] : memref<16x144xf32, #tpu.memory_space<vmem>>, vector<16x144xf32>
    %c17_i32_32 = arith.constant 17 : i32
    %126 = tpu.dynamic_rotate %124 by %c17_i32_32 dim 1 : vector<16x256xf32>, i32 -> vector<16x256xf32>
    %127 = vector.extract_strided_slice %1 {offsets = [0, 0], sizes = [1, 256], strides = [1, 1]} : vector<9x256xf32> to vector<1x256xf32>
    %128 = vector.broadcast %127 : vector<1x256xf32> to vector<16x256xf32>
    %129 = arith.mulf %126, %128 : vector<16x256xf32>
    %c16_i32_33 = arith.constant 16 : i32
    %130 = tpu.dynamic_rotate %124 by %c16_i32_33 dim 1 : vector<16x256xf32>, i32 -> vector<16x256xf32>
    %131 = vector.extract_strided_slice %1 {offsets = [1, 0], sizes = [1, 256], strides = [1, 1]} : vector<9x256xf32> to vector<1x256xf32>
    %132 = vector.broadcast %131 : vector<1x256xf32> to vector<16x256xf32>
    %133 = arith.mulf %130, %132 : vector<16x256xf32>
    %c15_i32_34 = arith.constant 15 : i32
    %134 = tpu.dynamic_rotate %124 by %c15_i32_34 dim 1 : vector<16x256xf32>, i32 -> vector<16x256xf32>
    %135 = vector.extract_strided_slice %1 {offsets = [2, 0], sizes = [1, 256], strides = [1, 1]} : vector<9x256xf32> to vector<1x256xf32>
    %136 = vector.broadcast %135 : vector<1x256xf32> to vector<16x256xf32>
    %137 = arith.mulf %134, %136 : vector<16x256xf32>
    %c1_i32_35 = arith.constant 1 : i32
    %138 = tpu.dynamic_rotate %124 by %c1_i32_35 dim 1 : vector<16x256xf32>, i32 -> vector<16x256xf32>
    %139 = vector.extract_strided_slice %1 {offsets = [3, 0], sizes = [1, 256], strides = [1, 1]} : vector<9x256xf32> to vector<1x256xf32>
    %140 = vector.broadcast %139 : vector<1x256xf32> to vector<16x256xf32>
    %141 = arith.mulf %138, %140 : vector<16x256xf32>
    %c255_i32_36 = arith.constant 255 : i32
    %142 = tpu.dynamic_rotate %124 by %c255_i32_36 dim 1 : vector<16x256xf32>, i32 -> vector<16x256xf32>
    %143 = vector.extract_strided_slice %1 {offsets = [5, 0], sizes = [1, 256], strides = [1, 1]} : vector<9x256xf32> to vector<1x256xf32>
    %144 = vector.broadcast %143 : vector<1x256xf32> to vector<16x256xf32>
    %145 = arith.mulf %142, %144 : vector<16x256xf32>
    %c241_i32_37 = arith.constant 241 : i32
    %146 = tpu.dynamic_rotate %124 by %c241_i32_37 dim 1 : vector<16x256xf32>, i32 -> vector<16x256xf32>
    %147 = vector.extract_strided_slice %1 {offsets = [6, 0], sizes = [1, 256], strides = [1, 1]} : vector<9x256xf32> to vector<1x256xf32>
    %148 = vector.broadcast %147 : vector<1x256xf32> to vector<16x256xf32>
    %149 = arith.mulf %146, %148 : vector<16x256xf32>
    %c240_i32_38 = arith.constant 240 : i32
    %150 = tpu.dynamic_rotate %124 by %c240_i32_38 dim 1 : vector<16x256xf32>, i32 -> vector<16x256xf32>
    %151 = vector.extract_strided_slice %1 {offsets = [7, 0], sizes = [1, 256], strides = [1, 1]} : vector<9x256xf32> to vector<1x256xf32>
    %152 = vector.broadcast %151 : vector<1x256xf32> to vector<16x256xf32>
    %153 = arith.mulf %150, %152 : vector<16x256xf32>
    %c239_i32_39 = arith.constant 239 : i32
    %154 = tpu.dynamic_rotate %124 by %c239_i32_39 dim 1 : vector<16x256xf32>, i32 -> vector<16x256xf32>
    %155 = vector.extract_strided_slice %1 {offsets = [8, 0], sizes = [1, 256], strides = [1, 1]} : vector<9x256xf32> to vector<1x256xf32>
    %156 = vector.broadcast %155 : vector<1x256xf32> to vector<16x256xf32>
    %157 = arith.mulf %154, %156 : vector<16x256xf32>
    %158 = tpu.concatenate %129, %133, %137, %141, %124, %145, %149, %153, %157 in 0 : vector<16x256xf32>, vector<16x256xf32>, vector<16x256xf32>, vector<16x256xf32>, vector<16x256xf32>, vector<16x256xf32>, vector<16x256xf32>, vector<16x256xf32>, vector<16x256xf32> -> vector<144x256xf32>
    %cst_40 = arith.constant dense<0.000000e+00> : vector<16x256xf32>
    %159 = tpu.matmul %125, %158, %cst_40 {dimension_numbers = #tpu.dot_dimension_numbers<[1], [0], [0], [1], [0, 0, 1, 1], [], []>} : vector<16x144xf32>, vector<144x256xf32>, vector<16x256xf32> -> vector<16x256xf32>
    %160 = vector.broadcast %10 : vector<16x1xf32> to vector<16x256xf32>
    %161 = arith.addf %159, %160 : vector<16x256xf32>
    %cst_41 = arith.constant dense<0.000000e+00> : vector<16x8xf32>
    %162 = tpu.matmul %161, %2, %cst_41 {dimension_numbers = #tpu.dot_dimension_numbers<[1], [1], [0], [0], [0, 0, 1, 0], [], []>} : vector<16x256xf32>, vector<8x256xf32>, vector<16x8xf32> -> vector<16x8xf32>
    %cst_42 = arith.constant 3.906250e-03 : f32
    %163 = vector.broadcast %cst_42 : f32 to vector<16x8xf32>
    %164 = arith.mulf %162, %163 : vector<16x8xf32>
    %c0_43 = arith.constant 0 : index
    %c0_44 = arith.constant 0 : index
    %165 = vector.load %arg9[%c0_43, %c0_44] : memref<2x16xf32, #tpu.memory_space<vmem>>, vector<2x16xf32>
    %cst_45 = arith.constant dense<0.000000e+00> : vector<2x8xf32>
    %166 = tpu.matmul %165, %164, %cst_45 {dimension_numbers = #tpu.dot_dimension_numbers<[1], [0], [0], [1], [0, 0, 1, 1], [], []>} : vector<2x16xf32>, vector<16x8xf32>, vector<2x8xf32> -> vector<2x8xf32>
    %cst_46 = arith.constant 0.000000e+00 : f32
    %167 = vector.broadcast %cst_46 : f32 to vector<2x8xf32>
    %168 = arith.maximumf %166, %167 : vector<2x8xf32>
    %c0_47 = arith.constant 0 : index
    %c0_48 = arith.constant 0 : index
    %169 = vector.load %arg10[%c0_47, %c0_48] : memref<16x2xf32, #tpu.memory_space<vmem>>, vector<16x2xf32>
    %cst_49 = arith.constant dense<0.000000e+00> : vector<16x8xf32>
    %170 = tpu.matmul %169, %168, %cst_49 {dimension_numbers = #tpu.dot_dimension_numbers<[1], [0], [0], [1], [0, 0, 1, 1], [], []>} : vector<16x2xf32>, vector<2x8xf32>, vector<16x8xf32> -> vector<16x8xf32>
    %171 = arith.negf %170 : vector<16x8xf32>
    %172 = math.exp %171 : vector<16x8xf32>
    %cst_50 = arith.constant 1.000000e+00 : f32
    %173 = vector.broadcast %cst_50 : f32 to vector<16x8xf32>
    %174 = arith.addf %173, %172 : vector<16x8xf32>
    %175 = arith.divf %173, %174 : vector<16x8xf32>
    %cst_51 = arith.constant dense<0.000000e+00> : vector<16x256xf32>
    %176 = tpu.matmul %175, %2, %cst_51 {dimension_numbers = #tpu.dot_dimension_numbers<[1], [0], [0], [1], [0, 0, 1, 1], [], []>} : vector<16x8xf32>, vector<8x256xf32>, vector<16x256xf32> -> vector<16x256xf32>
    %177 = arith.mulf %161, %176 : vector<16x256xf32>
    %178 = arith.addf %177, %88 : vector<16x256xf32>
    %c0_52 = arith.constant 0 : index
    %c0_53 = arith.constant 0 : index
    %179 = vector.load %arg11[%c0_52, %c0_53] : memref<16x256xf32, #tpu.memory_space<vmem>>, vector<16x256xf32>
    tpu.vector_store %arg11[%c0_52, %c0_53], %178 {strides = array<i32>} : memref<16x256xf32, #tpu.memory_space<vmem>>, vector<16x256xf32>,
    return
  }
  func.func @transform_0(%arg0: i32) -> (i32, i32) {
    %c0_i32 = arith.constant 0 : i32
    %c0_i32_0 = arith.constant 0 : i32
    return %c0_i32, %arg0 : i32, i32
  }
  func.func @transform_1(%arg0: i32) -> (i32, i32) {
    %c0_i32 = arith.constant 0 : i32
    %c0_i32_0 = arith.constant 0 : i32
    %c0_i32_1 = arith.constant 0 : i32
    return %c0_i32, %c0_i32_0 : i32, i32
  }
  func.func @transform_2(%arg0: i32) -> (i32, i32) {
    %c0_i32 = arith.constant 0 : i32
    %c0_i32_0 = arith.constant 0 : i32
    %c0_i32_1 = arith.constant 0 : i32
    return %c0_i32, %c0_i32_0 : i32, i32
  }
  func.func @transform_3(%arg0: i32) -> (i32, i32) {
    %c0_i32 = arith.constant 0 : i32
    %c0_i32_0 = arith.constant 0 : i32
    %c0_i32_1 = arith.constant 0 : i32
    return %c0_i32, %c0_i32_0 : i32, i32
  }
  func.func @transform_4(%arg0: i32) -> (i32, i32) {
    %c0_i32 = arith.constant 0 : i32
    %c0_i32_0 = arith.constant 0 : i32
    %c0_i32_1 = arith.constant 0 : i32
    return %c0_i32, %c0_i32_0 : i32, i32
  }
  func.func @transform_5(%arg0: i32) -> (i32, i32) {
    %c0_i32 = arith.constant 0 : i32
    %c0_i32_0 = arith.constant 0 : i32
    %c0_i32_1 = arith.constant 0 : i32
    return %c0_i32, %c0_i32_0 : i32, i32
  }
  func.func @transform_6(%arg0: i32) -> (i32, i32) {
    %c0_i32 = arith.constant 0 : i32
    %c0_i32_0 = arith.constant 0 : i32
    %c0_i32_1 = arith.constant 0 : i32
    return %c0_i32, %c0_i32_0 : i32, i32
  }
  func.func @transform_7(%arg0: i32) -> (i32, i32) {
    %c0_i32 = arith.constant 0 : i32
    %c0_i32_0 = arith.constant 0 : i32
    %c0_i32_1 = arith.constant 0 : i32
    return %c0_i32, %c0_i32_0 : i32, i32
  }
  func.func @transform_8(%arg0: i32) -> (i32, i32) {
    %c0_i32 = arith.constant 0 : i32
    %c0_i32_0 = arith.constant 0 : i32
    %c0_i32_1 = arith.constant 0 : i32
    return %c0_i32, %c0_i32_0 : i32, i32
  }
  func.func @transform_9(%arg0: i32) -> (i32, i32) {
    %c0_i32 = arith.constant 0 : i32
    %c0_i32_0 = arith.constant 0 : i32
    %c0_i32_1 = arith.constant 0 : i32
    return %c0_i32, %c0_i32_0 : i32, i32
  }
  func.func @transform_10(%arg0: i32) -> (i32, i32) {
    %c0_i32 = arith.constant 0 : i32
    %c0_i32_0 = arith.constant 0 : i32
    return %c0_i32, %arg0 : i32, i32
  }
}

</mosaic_0001>

<bundles_post_ra>
// kernel: tpu_custom_call.1
= control target key start
LH: loop header
LB: loop body
LE: loop exit
PB: predicated region body
PF: predicated region fallthrough
CT: control target
= control target key end

     0   :  { %15 = vsyncpa [#allocation3], 0  ;;  %s3037_s0 = inlined_call_operand.vmem [shape: f32[8,512], index: 0, kind: input, shape index: {}]   ;;  %s3038_s1 = inlined_call_operand.vmem [shape: f32[9,256], index: 1, kind: input, shape index: {}]   ;;  %s3039_s2 = inlined_call_operand.hbm [shape: f32[8,256], index: 2, kind: input, shape index: {}]   ;;  %s3040_s3 = inlined_call_operand.vmem [shape: f32[8,2], index: 3, kind: input, shape index: {}]   ;;  %s3041_s4 = inlined_call_operand.hbm [shape: f32[16,72], index: 4, kind: input, shape index: {}]   ;;  %s3042_s5 = inlined_call_operand.vmem [shape: f32[16,8], index: 5, kind: input, shape index: {}]   ;;  %s3043_s6 = inlined_call_operand.vmem [shape: f32[16,5], index: 6, kind: input, shape index: {}]   ;;  %s3044_s7 = inlined_call_operand.vmem [shape: f32[16,144], index: 7, kind: input, shape index: {}]   ;;  %s3045_s8 = inlined_call_operand.vmem [shape: f32[2,16], index: 8, kind: input, shape index: {}]   ;;  %s3046_s9 = inlined_call_operand.vmem [shape: f32[16,2], index: 9, kind: input, shape index: {}]   ;;  %s3047_s10 = inlined_call_operand.hbm [shape: f32[16,512], index: 10, kind: output, shape index: {}]  }
   0x1   :  { %16 = vsyncpa [#allocation6], 0 }
   0x2   :  { %17 = vsyncpa [#allocation4], 0 }
   0x3   :  { %19 = vsyncpa [#allocation4 + $0x1], 0  ;;  %s2339_s13 = smov 0   ;;  %s2341_s14 = smov 0  }
   0x4   :  { %s2343_s15 = smov 0   ;;  %s2345_s16 = smov 0  }
   0x5 LB: > { %3052 = sst [smem:[#allocation11_spill]] %s2255_s15  ;;  %s2360_s17 = sadd.s32 4294967295, %s2259_s16   ;;  %s2259_s16 = sphi %s2345_s16, %s3069_s16   ;;  %s2255_s15 = sphi %s2343_s15, %s3066_s15   ;;  %s2251_s14 = sphi %s2341_s14, %s3068_s14   ;;  %s2247_s13 = sphi %s2339_s13, %s3067_s13  }
   0x6   : > { %s1891_s18 = sadd.s32 4294967294, %s2259_s16   ;;  %s2364_s19 = sadd.s32 1, %s2259_s16  }
   0x7   : > { %s247_s20 = sadd.s32 1, %s2255_s15  ;;  %s244_s21 = ssub.s32 %s2259_s16, %s2364_s19 }
   0x8   : > { %p257_p0 = scmp.ne.s32.totalorder %s2255_s15, %s2251_s14  ;;  %p245_p1 = scmp.eq.s32.totalorder %s244_s21, 0 }
   0x9   : > { %p258_p2 = scmp.eq.s32.totalorder %s2360_s17, 1  ;;  %p263_p3 = scmp.ne.s32.totalorder %s2251_s14, %s2247_s13 }
   0xa   : > { %p264_p4 = scmp.eq.s32.totalorder %s1891_s18, 1  ;;  %p1892_p7 = scmp.ge.s32.totalorder %s2259_s16, 1 }
   0xb   : > { %s2375_s22 = scalar_select %p245_p1, %s2255_s15, %s247_s20  }
   0xc   : > { %p2377_p5 = por %p258_p2, %p257_p0  ;;  %p2381_p6 = por %p264_p4, %p263_p3 }
   0xd   : > { %3053 = sst [smem:[#allocation12_spill]] %s2375_s22  ;;  %p271_p8 = scmp.lt.s32.totalorder %s2259_s16, 3 }
   0xe   : > { %s3054_s23 = scalar_select %p2377_p5, 1, 0 }
   0xf   : > { %s3055_s24 = scalar_select %p2381_p6, 1, 0 }
  0x10   : > { %p3048_p9 = scmp.eq.s32.totalorder %s2360_s17, 0  ;;  %p2388_p10 = pnand %p1892_p7, %p271_p8 }
  0x11   : > { %s2261_s26 = smov [#allocation2]   ;;  %s2262_s28 = smov [#allocation5]  }
  0x12   : > { %s3056_s25 = scalar_select %p2388_p10, 1, 0 }
  0x13   : > { %s287_s27 = sshll.u32 %s2261_s26, 4  ;;  %p2015_p11 = pneg %p2388_p10  ;;  %s288_s27 = int_to_ptr.vmem [resolvable:$true] %s287_s27 }
  0x14   : > { %s300_s29 = sshll.u32 %s2262_s28, 4  ;;  %s2133_s18 = scalar_lea.hbm %s3039_s2, 256  ;;  %s2400_s29 = int_to_ptr.vmem [resolvable:$true] %s300_s29 }
  0x15   : > { %p2396_p12 = pnand %p3048_p9, %p2015_p11  ;;  %p2134_p13 = scmp.ne.s32.totalorder %s3039_s2, %s2133_s18 }
  0x16   : > { %p2140_p3 = scmp.lt.u32.totalorder %s2133_s18, %s3039_s2 }
  0x17   : > { %p2135_p0 = pneg %p2396_p12 }
  0x19   : > { %p2136_p1 = pnand %p2135_p0, %p2134_p13 }
  0x1b   : > { %p2137_p2 = pneg %p2136_p1 }
  0x1d   : > { %p2142_p4 = pnand %p2140_p3, %p2137_p2 }
  0x1f   : > { %2145 = shalt.err (!%p2142_p4)
}
  0x20   : > { %s2146_s22 = scalar_lea.vmem %s288_s27, 256  ;;  %p2154_p9 = scmp.lt.s32.totalorder %s288_s27, %s288_s27 }
  0x21   : > { %p2147_p7 = scmp.ne.s32.totalorder %s288_s27, %s2146_s22  ;;  %p2155_p6 = scmp.lt.s32.totalorder %s2146_s22, %s2146_s22 }
  0x23   : > { %p2149_p8 = pnand %p2147_p7, %p2135_p0  ;;  %p2156_p5 = por %p2155_p6, %p2154_p9 }
  0x25   : > { %p2150_p11 = pneg %p2149_p8 }
  0x27   : > { %p2157_p10 = pnand %p2156_p5, %p2150_p11 }
  0x29   : > { %2160 = shalt.err (!%p2157_p10)
}
  0x2a   : > { %2018 = dma.hbm_to_vmem [thread:$0]  (!%p2396_p12), %s3039_s2, 256, %s288_s27, [#allocation3]  }
  0x2b   : > { %s2161_s21 = scalar_lea.hbm %s3041_s4, 256 }
  0x2c   : > { %p2162_p13 = scmp.ne.s32.totalorder %s3041_s4, %s2161_s21  ;;  %p2168_p9 = scmp.lt.u32.totalorder %s2161_s21, %s3041_s4 }
  0x2e   : > { %p2164_p6 = pnand %p2162_p13, %p2135_p0 }
  0x30   : > { %p2165_p5 = pneg %p2164_p6 }
  0x32   : > { %p2170_p10 = pnand %p2168_p9, %p2165_p5 }
  0x34   : > { %2173 = shalt.err (!%p2170_p10)
}
  0x35   : > { %s2174_s27 = scalar_lea.vmem %s2400_s29, 256  ;;  %p2182_p4 = scmp.lt.s32.totalorder %s2400_s29, %s2400_s29 }
  0x36   : > { %p2175_p1 = scmp.ne.s32.totalorder %s2400_s29, %s2174_s27  ;;  %p2183_p7 = scmp.lt.s32.totalorder %s2174_s27, %s2174_s27 }
  0x38   : > { %p2177_p2 = pnand %p2175_p1, %p2135_p0  ;;  %p2184_p8 = por %p2183_p7, %p2182_p4 }
  0x3a   : > { %p2178_p3 = pneg %p2177_p2 }
  0x3c   : > { %p2185_p11 = pnand %p2184_p8, %p2178_p3 }
  0x3e   : > { %2188 = shalt.err (!%p2185_p11)
}
  0x3f   : > { %s2263_s15 = smov 128   ;;  %s2264_s11 = smov 8  }
  0x40   : > { %2021 = dma.hbm_to_vmem [thread:$0]  (!%p2396_p12), %s3041_s4, 256, %s2400_s29, [#allocation6], %s2263_s15, %s2263_s15, %s2264_s11  }
  0x41   : > { %p3058_p13 = scmp.ne.s32.totalorder %s3056_s25, 0 }
  0x42   : > { %p3059_p0 = scmp.eq.s32.totalorder (!%p3058_p13), %s2360_s17, 0 }
  0x43   : > { %340 = sbr.rel (%p3058_p13) target bundleno = 2776 (0xad8), region = 60 }
  0x4a   : > { %2234 = dma.done.wait (%p3059_p0), [#allocation3], 256   ;;  %p3060_p6 = pmov %p3059_p0 }
  0x4b   : > { %p3061_p5 = pmov %p3059_p0 }
  0x4c   : > { %2236 = vsyncadd (%p3060_p6), [#allocation3], 4294967040 }
  0x4d   : > { %2238 = dma.done.wait (%p3061_p5), [#allocation6], 256   ;;  %p3062_p9 = pmov %p3059_p0 }
  0x4e   : > { %s1900_s30 = sshll.u32 %s2360_s17, 1  ;;  %v2463_v0 = vld [vmem:[#allocation2 + $0x8] sm:$0xff]  ;;  %v2465_v1 = vld [vmem:[#allocation2] sm:$0xff]  ;;  %vm426_vm0 = vcmask 1040384   ;;  %v2265_v32 = vmov 0.0   ;;  %v2266_v34 = vmov 0   ;;  %v584_v45 = vlaneseq }
  0x4f   : > { %2240 = vsyncadd (%p3062_p9), [#allocation6], 4294967040  ;;  %p383_p10 = scmp.lt.s32.totalorder %s1900_s30, 3  ;;  %429 = vmatprep.subr.mxu1 %v2463_v0  ;;  %945 = vmatprep.mubr.f32.mxu0 %v2265_v32  ;;  %v397_v33 = vld [vmem:[%s3040_s3] sm:$0xff]  ;;  %v2267_v35 = vmov 1   ;;  %vm509_vm1 = vcmask 64512  }
  0x50   : > { %430 = vmatpush1.xpose.msra.mxu1 %v2465_v1  ;;  %2085 = vset.pattern.permute.xlu0 %v2266_v34  ;;  %v2498_v46 = vshrl.u32 %v584_v45, 7  ;;  %s2268_s22 = smov 17   ;;  %s2269_s27 = smov 16   ;;  %vm781_vm10 = vcmask 588800   ;;  %vm1362_vm11 = vcmask 130048   ;;  %vm2280_vm12 = vmmov 0  }
  0x51   : > { %s3071_s30 = smov (!%p383_p10, %s1900_s30), 3  ;;  %513 = vmatprep.subr.mxu1 %v2463_v0  ;;  %2087 = vset.pattern.permute.xlu1 %v2266_v34  ;;  %s2270_s15 = smov 15   ;;  %vm1600_vm13 = vcmask 15360   ;;  %vm1607_vm14 = vcmask 1041408  }
  0x52   : > { %s1901_s29 = sshll.u32 %s3071_s30, 3  ;;  %606 = vperm.xlu0 %2085, %v397_v33   ;;  %v2501_v47 = vsub.s32 0, %v2498_v46  ;;  %v2504_v48 = vsub.s32 1, %v2498_v46  ;;  %s2271_s11 = smov 1  }
  0x53   : > { %s386_s21 = scalar_lea.vmem %s3037_s0, %s1901_s29  ;;  %s2272_s12 = smov 127  }
  0x54   : > { %v2467_v2 = vld [vmem:[%s386_s21 + $0x8] sm:$0xff]  ;;  %v2473_v5 = vld [vmem:[%s386_s21] sm:$0xff]  ;;  %s2273_s18 = smov 113   ;;  %s2274_s30 = smov 112  }
  0x55   : > { %v406_v3 = vrot.slane %v2467_v2, 4  ;;  %v413_v4 = vmul.f32 %v2467_v2, %v2467_v2  ;;  %881 = vmatprep.subr.mxu0 %v2467_v2  ;;  %v400_v6 = vrot.slane %v2473_v5, 4  ;;  %v412_v7 = vmul.f32 %v2473_v5, %v2473_v5  ;;  %s2275_s29 = smov 111   ;;  %p3063_p1 = scmp.ne.s32.totalorder %s3054_s23, 0 }
  0x56   : > { %882 = vmatpush1.msra.mxu0 %v2473_v5  ;;  %2086 = vset.pattern.permute.xlu0 %v2267_v35  ;;  %s2281_s20 = smov [#allocation7]  }
  0x57   : > { %v407_v8 = vadd.f32 %v406_v3, %v2467_v2  ;;  %v420_v9 = vrot.slane %v413_v4, 4  ;;  %992 = vmatprep.subr.mxu0 %v2463_v0  ;;  %v401_v10 = vadd.f32 %v400_v6, %v2473_v5  ;;  %v414_v11 = vrot.slane %v412_v7, 4  ;;  %612 = vperm.xlu0 %2086, %v397_v33  }
  0x59   : > { %v408_v12 = vrot.slane %v407_v8, 2  ;;  %v421_v13 = vadd.f32 %v420_v9, %v413_v4  ;;  %v402_v14 = vrot.slane %v401_v10, 2  ;;  %v415_v15 = vadd.f32 %v414_v11, %v412_v7 }
  0x5b   : > { %v409_v16 = vadd.f32 %v408_v12, %v407_v8  ;;  %v422_v17 = vrot.slane %v421_v13, 2  ;;  %v403_v18 = vadd.f32 %v402_v14, %v401_v10  ;;  %v416_v19 = vrot.slane %v415_v15, 2  ;;  %2088 = vset.pattern.permute.xlu0 %v2266_v34  ;;  %v2557_v14 = vld [vmem:[%s3043_s6] sm:$0xff] }
  0x5d   : > { %v410_v20 = vrot.slane %v409_v16, 1  ;;  %v423_v21 = vadd.f32 %v422_v17, %v421_v13  ;;  %v404_v22 = vrot.slane %v403_v18, 1  ;;  %v417_v23 = vadd.f32 %v416_v19, %v415_v15  ;;  %v2549_v13 = vld [vmem:[%s3043_s6 + $0x8] sm:$0xff] }
  0x5e   : > { %v2564_v19 = vand.u32 127, %v584_v45 }
  0x5f   : > { %v411_v24 = vadd.f32 %v410_v20, %v409_v16  ;;  %v424_v25 = vrot.slane %v423_v21, 1  ;;  %v405_v26 = vadd.f32 %v404_v22, %v403_v18  ;;  %v418_v27 = vrot.slane %v417_v23, 1 }
  0x60   : > { %vm656_vm2 = vcmp.lt.s32.totalorder %v2564_v19, 16  ;;  %vm690_vm3 = vcmp.lt.s32.totalorder %v2564_v19, 1  ;;  %vm673_vm4 = vcmp.lt.s32.totalorder %v2564_v19, 15  ;;  %vm639_vm5 = vcmp.lt.s32.totalorder %v2564_v19, 17 }
  0x61   : > { %v425_v28 = vadd.f32 %v424_v25, %v423_v21  ;;  %v419_v29 = vadd.f32 %v418_v27, %v417_v23  ;;  %v391_v21 = vld [vmem:[%s3038_s1] sm:$0xff]  ;;  %v695_v23 = vsub.s32 3, %v2498_v46  ;;  %v678_v25 = vsub.s32 2, %v2498_v46 }
  0x62   : > { %vm707_vm6 = vcmp.lt.s32.totalorder %v2564_v19, 127  ;;  %vm724_vm7 = vcmp.lt.s32.totalorder %v2564_v19, 113  ;;  %vm741_vm8 = vcmp.lt.s32.totalorder %v2564_v19, 112  ;;  %vm758_vm9 = vcmp.lt.s32.totalorder %v2564_v19, 111  ;;  %v1224_v19 = vld [vmem:[%s3044_s7 + $0x10] sm:$0xff] }
  0x63   : > { %v428_v30 = vsel %vm426_vm0, %v411_v24, %v425_v28  ;;  %v427_v31 = vsel %vm426_vm0, %v405_v26, %v419_v29  ;;  %v392_v24 = vld [vmem:[%s3038_s1 + $0x8] sm:$0xff]  ;;  %v2576_v26 = vrot.slane %v391_v21, %v2504_v48  ;;  %v712_v28 = vsub.s32 5, %v2498_v46 }
  0x64   : > { %493 = vmatprep.mubr.f32.mxu1 %v428_v30  ;;  %v2581_v29 = vrot.slane %v392_v24, %v2504_v48 }
  0x65   : > { %494 = vmatmul.mubr.f32.vlgmr.msra.gmra.mrb[0].mxu1 %v427_v31  ;;  %v2586_v31 = vrot.slane %v392_v24, %v695_v23 }
  0x66   : > { %514 = vmatpush1.msra.mxu1 %v2465_v1  ;;  %577 = vmatprep.mubr.f32.mxu1 %v2265_v32 }
  0xd1   : > { %v607_v50 = vpop.permute.xlu0 %606 }
  0xd6   : > { %v613_v60 = vpop.permute.xlu0 %612 }
 0x138   : > { %v495_v36 = vpop.f32.mrb[0].mxu1 }
 0x139   : > { %v500_v37 = vmul.f32 0.0009765625, %v495_v36  ;;  %v497_v38 = vpop.f32.mrb[1].mxu1  ;;  %v2595_v36 = vrot.slane %v392_v24, %v2501_v47 }
 0x13b   : > { %v501_v39 = vmul.f32 %v500_v37, %v500_v37 }
 0x13d   : > { %v503_v40 = vrot.slane %v501_v39, 7 }
 0x13f   : > { %v505_v41 = vsub.f32 %v500_v37, %v503_v40  ;;  %v2602_v40 = vrot.slane %v391_v21, %v695_v23 }
 0x141   : > { %v506_v42 = vadd.f32 1e-05, %v505_v41 }
 0x143   : > { %2095 = vrsqrt.f32 %v506_v42  ;;  %v2605_v42 = vrot.slane %v392_v24, %v712_v28 }
 0x14d   : > { %v2096_v43 = vpop.eup %2095 }
 0x14e   : > { %v508_v44 = vsel %vm426_vm0, %v500_v37, %v2096_v43  ;;  %v2597_v37 = vrot.slane %v392_v24, %v678_v25 }
 0x14f   : > { %1902 = vmatmul.mubr.msk.f32.vlgmr.msra.gmra.mrb[2].mxu1 %vm509_vm1, %v508_v44 }
 0x150   : > { %852 = vmatprep.mubr.f32.mxu1 %v2265_v32 }
 0x222   : > { %v579_v49 = vpop.f32.mrb[2].mxu1 }
 0x223   : > { %v587_v51 = vrot.slane %v579_v49, %v2501_v47  ;;  %v581_v52 = vpop.f32.mrb[3].mxu1  ;;  %v597_v55 = vrot.slane %v579_v49, %v2504_v48 }
 0x224   : > { %v591_v53 = vrot.slane %v581_v52, %v2501_v47  ;;  %v601_v57 = vrot.slane %v581_v52, %v2504_v48 }
 0x225   : > { %v592_v54 = vsub.f32 %v2473_v5, %v587_v51 }
 0x226   : > { %v593_v56 = vsub.f32 %v2467_v2, %v591_v53 }
 0x227   : > { %v602_v58 = vmul.f32 %v597_v55, %v592_v54  ;;  %v2619_v54 = vrot.slane %v391_v21, %v678_v25 }
 0x228   : > { %v603_v59 = vmul.f32 %v601_v57, %v593_v56 }
 0x229   : > { %v609_v61 = vmul.f32 %v607_v50, %v602_v58 }
 0x22a   : > { %v610_v62 = vmul.f32 %v607_v50, %v603_v59 }
 0x22b   : > { %v615_v63 = vadd.f32 %v613_v60, %v609_v61 }
 0x22c   : > { %v616_v3 = vadd.f32 %v613_v60, %v610_v62  ;;  %v2625_v62 = vrot.slane %v391_v21, %v712_v28 }
 0x22d   : > { %v1903_v4 = vmul.f32 -1.442695, %v615_v63 }
 0x22e   : > { %v1904_v6 = vmul.f32 -1.442695, %v616_v3 }
 0x22f   : > { %2097 = vpow2.f32 %v1903_v4 }
 0x230   : > { %2099 = vpow2.f32 %v1904_v6 }
 0x239   : > { %v2098_v7 = vpop.eup %2097 }
 0x23a   : > { %v2100_v8 = vpop.eup %2099  ;;  %v623_v5 = vadd.f32 1.0, %v2098_v7 }
 0x23b   : > { %v624_v9 = vadd.f32 1.0, %v2100_v8  ;;  %v746_v8 = vsub.s32 7, %v2498_v46 }
 0x23c   : > { %2101 = vrcp.f32 %v623_v5 }
 0x23d   : > { %2103 = vrcp.f32 %v624_v9 }
 0x246   : > { %v2102_v2 = vpop.eup %2101 }
 0x247   : > { %v2104_v10 = vpop.eup %2103  ;;  %v2512_v11 = vmul.f32 %v2102_v2, %v615_v63 }
 0x248   : > { %v2514_v12 = vmul.f32 %v2104_v10, %v616_v3  ;;  %v729_v3 = vsub.s32 6, %v2498_v46  ;;  %v2643_v46 = vrot.slane %v391_v21, %v746_v8 }
 0x249   : > { %633 = vrot.lane.b32.xlu1 %v2512_v11, %s2268_s22 }
 0x24a   : > { %654 = vrot.lane.b32.xlu0 %v2514_v12, %s2269_s27 }
 0x24d   : > { %652 = vrot.lane.b32.xlu1 %v2512_v11, %s2269_s27 }
 0x24e   : > { %671 = vrot.lane.b32.xlu0 %v2514_v12, %s2270_s15 }
 0x251   : > { %669 = vrot.lane.b32.xlu1 %v2512_v11, %s2270_s15 }
 0x252   : > { %688 = vrot.lane.b32.xlu0 %v2514_v12, %s2271_s11 }
 0x255   : > { %686 = vrot.lane.b32.xlu1 %v2512_v11, %s2271_s11 }
 0x256   : > { %705 = vrot.lane.b32.xlu0 %v2514_v12, %s2272_s12 }
 0x259   : > { %635 = vrot.lane.b32.xlu1 %v2514_v12, %s2268_s22 }
 0x25a   : > { %722 = vrot.lane.b32.xlu0 %v2514_v12, %s2273_s18 }
 0x25d   : > { %703 = vrot.lane.b32.xlu1 %v2512_v11, %s2272_s12 }
 0x25e   : > { %739 = vrot.lane.b32.xlu0 %v2514_v12, %s2274_s30 }
 0x261   : > { %720 = vrot.lane.b32.xlu1 %v2512_v11, %s2273_s18 }
 0x262   : > { %756 = vrot.lane.b32.xlu0 %v2514_v12, %s2275_s29 }
 0x265   : > { %737 = vrot.lane.b32.xlu1 %v2512_v11, %s2274_s30 }
 0x266   : > { %778 = vperm.xlu0 %2088, %v2549_v13  }
 0x269   : > { %754 = vrot.lane.b32.xlu1 %v2512_v11, %s2275_s29 }
 0x26d   : > { %773 = vperm.xlu1 %2087, %v2557_v14  }
 0x271   : > { %2089 = vset.pattern.permute.xlu1 %v2267_v35  ;;  %v2592_v35 = vrot.slane %v391_v21, %v2501_v47 }
 0x272   : > { %1171 = vperm.xlu1 %2089, %v2557_v14  }
 0x276   : > { %1175 = vperm.xlu1 %2089, %v2549_v13  }
 0x2bb   : > { %v634_v15 = vpop.permute.xlu1 %633 }
 0x2bc   : > { %v655_v16 = vpop.permute.xlu0 %654 }
 0x2bf   : > { %v653_v17 = vpop.permute.xlu1 %652 }
 0x2c0   : > { %v672_v18 = vpop.permute.xlu0 %671  ;;  %v658_v30 = vsel %vm656_vm2, %v655_v16, %v653_v17  ;;  %v657_v33 = vsel %vm656_vm2, %v653_v17, %v655_v16  ;;  %v2639_v16 = vrot.slane %v392_v24, %v729_v3 }
 0x2c1   : > { %v667_v39 = vmul.f32 %v2576_v26, %v658_v30  ;;  %v668_v43 = vmul.f32 %v2581_v29, %v657_v33 }
 0x2c3   : > { %v670_v20 = vpop.permute.xlu1 %669 }
 0x2c4   : > { %v689_v22 = vpop.permute.xlu0 %688  ;;  %v674_v44 = vsel %vm673_vm4, %v670_v20, %v672_v18  ;;  %v675_v55 = vsel %vm673_vm4, %v672_v18, %v670_v20  ;;  %v2645_v20 = vrot.slane %v392_v24, %v746_v8 }
 0x2c5   : > { %v685_v56 = vmul.f32 %v2597_v37, %v674_v44  ;;  %v684_v5 = vmul.f32 %v2619_v54, %v675_v55  ;;  %v2671_v44 = vld [vmem:[%s3038_s1 + $0x10] ss:$0 sm:$0xff]  ;;  %v866_v55 = vld [vmem:[%s3042_s5 + $0x8] sm:$0xff] }
 0x2c7   : > { %v687_v27 = vpop.permute.xlu1 %686 }
 0x2c8   : > { %v706_v34 = vpop.permute.xlu0 %705  ;;  %v691_v38 = vsel %vm690_vm3, %v687_v27, %v689_v22  ;;  %v692_v50 = vsel %vm690_vm3, %v689_v22, %v687_v27 }
 0x2c9   : > { %v702_v51 = vmul.f32 %v2586_v31, %v691_v38  ;;  %v701_v61 = vmul.f32 %v2602_v40, %v692_v50 }
 0x2cb   : > { %v636_v41 = vpop.permute.xlu1 %635  ;;  %v1954_v7 = vpack.c.bf16 %v702_v51, %v685_v56  ;;  %v1956_v2 = vpack.c.bf16 %v701_v61, %v684_v5  ;;  %v631_v51 = vld [vmem:[#allocation5] sm:$0xff] }
 0x2cc   : > { %v640_v45 = vsel %vm639_vm5, %v634_v15, %v636_v41  ;;  %v641_v49 = vsel %vm639_vm5, %v636_v41, %v634_v15  ;;  %v723_v58 = vpop.permute.xlu0 %722  ;;  %v2637_v15 = vrot.slane %v391_v21, %v729_v3 }
 0x2cd   : > { %v650_v52 = vmul.f32 %v2592_v35, %v641_v49  ;;  %v651_v53 = vmul.f32 %v2595_v36, %v640_v45 }
 0x2cf   : > { %v1952_v57 = vpack.c.bf16 %v667_v39, %v650_v52  ;;  %v704_v59 = vpop.permute.xlu1 %703  ;;  %v1950_v60 = vpack.c.bf16 %v668_v43, %v651_v53  ;;  %v632_v52 = vld [vmem:[#allocation5 + $0x8] sm:$0xff]  ;;  %v865_v53 = vld [vmem:[%s3042_s5] sm:$0xff] }
 0x2d0   : > { %v709_v63 = vsel %vm707_vm6, %v706_v34, %v704_v59  ;;  %v708_v4 = vsel %vm707_vm6, %v704_v59, %v706_v34  ;;  %v740_v17 = vpop.permute.xlu0 %739  ;;  %1909 = vmatmul.mubr.msk.f32.vlgmr.msra.gmra.mrb[0].mxu0 %vm509_vm1, %v865_v53 }
 0x2d1   : > { %v719_v6 = vmul.f32 %v2605_v42, %v709_v63  ;;  %1951 = vmatprep.subr.bf16.mxu1 %v1950_v60  ;;  %v718_v10 = vmul.f32 %v2625_v62, %v708_v4  ;;  %951 = vmatprep.mubr.f32.mxu0 %v2265_v32 }
 0x2d2   : > { %1953 = vmatpush1.bf16.msra.mxu1 %v1952_v57  ;;  %993 = vmatpush1.xpose.msra.mxu0 %v2465_v1 }
 0x2d3   : > { %1955 = vmatprep.subr.bf16.mxu1 %v1954_v7  ;;  %v721_v9 = vpop.permute.xlu1 %720  ;;  %v1958_v18 = vpack.c.bf16 %v719_v6, %v2514_v12  ;;  %v1960_v27 = vpack.c.bf16 %v718_v10, %v2512_v11  ;;  %v2664_v11 = vld [vmem:[%s3038_s1 + $0x18] ss:$0 sm:$0xff]  ;;  %1075 = vmatprep.subr.mxu0 %v2463_v0 }
 0x2d4   : > { %v725_v22 = vsel %vm724_vm7, %v721_v9, %v723_v58  ;;  %v726_v23 = vsel %vm724_vm7, %v723_v58, %v721_v9  ;;  %v757_v34 = vpop.permute.xlu0 %756  ;;  %1910 = vmatmul.mubr.msk.f32.gmra.mrb[2].mxu0 %vm509_vm1, %v866_v55 }
 0x2d5   : > { %v735_v24 = vmul.f32 %v2637_v15, %v725_v22  ;;  %v736_v28 = vmul.f32 %v2639_v16, %v726_v23 }
 0x2d6   : > { %1957 = vmatpush1.bf16.msra.mxu1 %v1956_v2 }
 0x2d7   : > { %1959 = vmatprep.subr.bf16.mxu1 %v1958_v18  ;;  %v738_v25 = vpop.permute.xlu1 %737 }
 0x2d8   : > { %v742_v12 = vsel %vm741_vm8, %v738_v25, %v740_v17  ;;  %v743_v21 = vsel %vm741_vm8, %v740_v17, %v738_v25 }
 0x2d9   : > { %v752_v30 = vmul.f32 %v2643_v46, %v742_v12  ;;  %v753_v33 = vmul.f32 %v2645_v20, %v743_v21 }
 0x2da   : > { %1961 = vmatpush1.bf16.msra.mxu1 %v1960_v27 }
 0x2db   : > { %v1964_v38 = vpack.c.bf16 %v752_v30, %v735_v24  ;;  %v755_v39 = vpop.permute.xlu1 %754  ;;  %v1962_v41 = vpack.c.bf16 %v753_v33, %v736_v28 }
 0x2dc   : > { %v760_v43 = vsel %vm758_vm9, %v757_v34, %v755_v39  ;;  %v759_v45 = vsel %vm758_vm9, %v755_v39, %v757_v34 }
 0x2dd   : > { %v770_v49 = vmul.f32 %v2664_v11, %v760_v43  ;;  %1963 = vmatprep.subr.bf16.mxu1 %v1962_v41  ;;  %v769_v50 = vmul.f32 %v2671_v44, %v759_v45 }
 0x2de   : > { %1965 = vmatpush1.bf16.msra.mxu1 %v1964_v38 }
 0x2df   : > { %804 = vmatprep.subr.mxu1 %v770_v49 }
 0x2e2   : > { %805 = vmatpush1.msra.mxu1 %v769_v50 }
 0x2e3   : > { %1907 = vmatmul.mubr.msk.f32.vlgmr.msra.gmra.mrb[4].mxu1 %vm781_vm10, %v631_v51  ;;  %1446 = vmatprep.subr.mxu1 %v2463_v0 }
 0x2e4   : > { %858 = vmatprep.mubr.f32.mxu1 %v2265_v32 }
 0x2e5   : > { %v779_v59 = vpop.permute.xlu0 %778 }
 0x2e7   : > { %1908 = vmatmul.mubr.msk.f32.gmra.mrb[6].mxu1 %vm781_vm10, %v632_v52 }
 0x2e9   : > { %1447 = vmatpush1.xpose.msra.mxu1 %v2465_v1 }
 0x2ec   : > { %v774_v57 = vpop.permute.xlu1 %773 }
 0x3b6   : > { %v854_v56 = vpop.f32.mrb[4].mxu1 }
 0x3b7   : > { %v856_v58 = vpop.f32.mrb[5].mxu1  ;;  %v2691_v60 = vadd.f32 %v854_v56, %v774_v57 }
 0x3b8   : > { %v2693_v61 = vadd.f32 %v856_v58, %v774_v57 }
 0x3b9   : > { %v972_v7 = vmul.f32 %v2691_v60, %v2691_v60 }
 0x3ba   : > { %v860_v63 = vpop.f32.mrb[6].mxu1  ;;  %v973_v5 = vmul.f32 %v2693_v61, %v2693_v61 }
 0x3bb   : > { %v2695_v3 = vadd.f32 %v860_v63, %v779_v59  ;;  %v862_v4 = vpop.f32.mrb[7].mxu1 }
 0x3bc   : > { %v2697_v6 = vadd.f32 %v862_v4, %v779_v59  ;;  %v2715_v59 = vpop.f32.mrb[0].mxu0 }
 0x3bd   : > { %v958_v0 = vadd.f32 %v2695_v3, %v2691_v60  ;;  %v974_v8 = vmul.f32 %v2695_v3, %v2695_v3  ;;  %v2717_v63 = vpop.f32.mrb[1].mxu0 }
 0x3be   : > { %v965_v9 = vadd.f32 %v2697_v6, %v2693_v61  ;;  %v975_v2 = vmul.f32 %v2697_v6, %v2697_v6  ;;  %v2719_v4 = vpop.f32.mrb[2].mxu0 }
 0x3bf   : > { %v959_v10 = vrot.slane %v958_v0, 4  ;;  %v976_v17 = vadd.f32 %v974_v8, %v972_v7  ;;  %v2721_v7 = vpop.f32.mrb[3].mxu0 }
 0x3c0   : > { %v966_v18 = vrot.slane %v965_v9, 4  ;;  %v983_v22 = vadd.f32 %v975_v2, %v973_v5 }
 0x3c1   : > { %v960_v23 = vadd.f32 %v959_v10, %v958_v0  ;;  %v977_v25 = vrot.slane %v976_v17, 4  ;;  %v2276_v0 = vmov 2  }
 0x3c2   : > { %v967_v27 = vadd.f32 %v966_v18, %v965_v9  ;;  %v984_v12 = vrot.slane %v983_v22, 4  ;;  %2090 = vset.pattern.permute.xlu0 %v2276_v0  ;;  %2091 = vset.pattern.permute.xlu1 %v2276_v0 }
 0x3c3   : > { %v961_v21 = vrot.slane %v960_v23, 2  ;;  %v978_v24 = vadd.f32 %v977_v25, %v976_v17  ;;  %1183 = vperm.xlu0 %2090, %v2557_v14   ;;  %1187 = vperm.xlu1 %2091, %v2549_v13   ;;  %v1172_v25 = vpop.permute.xlu1 %1171 }
 0x3c4   : > { %v968_v28 = vrot.slane %v967_v27, 2  ;;  %v985_v30 = vadd.f32 %v984_v12, %v983_v22 }
 0x3c5   : > { %v962_v33 = vadd.f32 %v961_v21, %v960_v23  ;;  %v979_v34 = vrot.slane %v978_v24, 2  ;;  %v2277_v23 = vmov 3  }
 0x3c6   : > { %v969_v38 = vadd.f32 %v968_v28, %v967_v27  ;;  %v986_v39 = vrot.slane %v985_v30, 2 }
 0x3c7   : > { %v980_v41 = vadd.f32 %v979_v34, %v978_v24  ;;  %v963_v49 = vrot.slane %v962_v33, 1  ;;  %2092 = vset.pattern.permute.xlu1 %v2277_v23  ;;  %2093 = vset.pattern.permute.xlu0 %v2277_v23  ;;  %v1176_v24 = vpop.permute.xlu1 %1175 }
 0x3c8   : > { %v970_v43 = vrot.slane %v969_v38, 1  ;;  %v987_v45 = vadd.f32 %v986_v39, %v985_v30 }
 0x3c9   : > { %v981_v50 = vrot.slane %v980_v41, 1  ;;  %v964_v56 = vadd.f32 %v963_v49, %v962_v33 }
 0x3ca   : > { %v988_v51 = vrot.slane %v987_v45, 1  ;;  %v971_v53 = vadd.f32 %v970_v43, %v969_v38 }
 0x3cb   : > { %v982_v52 = vadd.f32 %v981_v50, %v980_v41 }
 0x3cc   : > { %v989_v55 = vadd.f32 %v988_v51, %v987_v45 }
 0x3cd   : > { %v990_v58 = vsel %vm426_vm0, %v964_v56, %v982_v52 }
 0x3ce   : > { %v991_v57 = vsel %vm426_vm0, %v971_v53, %v989_v55 }
 0x3cf   : > { %1056 = vmatprep.mubr.f32.mxu0 %v991_v57 }
 0x3d0   : > { %1057 = vmatmul.mubr.f32.vlgmr.msra.gmra.mrb[4].mxu0 %v990_v58 }
 0x3d1   : > { %1076 = vmatpush1.msra.mxu0 %v2465_v1  ;;  %1139 = vmatprep.mubr.f32.mxu0 %v2265_v32 }
 0x442   : > { %v1184_v51 = vpop.permute.xlu0 %1183  ;;  %v1188_v52 = vpop.permute.xlu1 %1187 }
 0x4a3   : > { %v1058_v8 = vpop.f32.mrb[4].mxu0 }
 0x4a4   : > { %v1063_v5 = vmul.f32 0.00024414063, %v1058_v8  ;;  %v1060_v1 = vpop.f32.mrb[5].mxu0 }
 0x4a6   : > { %v1064_v9 = vmul.f32 %v1063_v5, %v1063_v5 }
 0x4a8   : > { %v1066_v2 = vrot.slane %v1064_v9, 7 }
 0x4aa   : > { %v1068_v10 = vsub.f32 %v1063_v5, %v1066_v2 }
 0x4ac   : > { %v1069_v17 = vadd.f32 1e-05, %v1068_v10 }
 0x4ae   : > { %2105 = vrsqrt.f32 %v1069_v17 }
 0x4b8   : > { %v2106_v18 = vpop.eup %2105 }
 0x4b9   : > { %v1071_v22 = vsel %vm426_vm0, %v1063_v5, %v2106_v18 }
 0x4ba   : > { %1911 = vmatmul.mubr.msk.f32.vlgmr.msra.gmra.mrb[6].mxu0 %vm509_vm1, %v1071_v22 }
 0x58d   : > { %v1141_v27 = vpop.f32.mrb[6].mxu0 }
 0x58e   : > { %v1149_v12 = vrot.slane %v1141_v27, %v2501_v47  ;;  %v1143_v21 = vpop.f32.mrb[7].mxu0  ;;  %v1161_v34 = vrot.slane %v1141_v27, %v2504_v48 }
 0x58f   : > { %v1153_v28 = vrot.slane %v1143_v21, %v2501_v47  ;;  %v1165_v41 = vrot.slane %v1143_v21, %v2504_v48 }
 0x590   : > { %v1154_v30 = vsub.f32 %v2691_v60, %v1149_v12  ;;  %v1156_v33 = vsub.f32 %v2695_v3, %v1149_v12 }
 0x591   : > { %v1155_v38 = vsub.f32 %v2693_v61, %v1153_v28  ;;  %v1157_v39 = vsub.f32 %v2697_v6, %v1153_v28 }
 0x592   : > { %v1166_v43 = vmul.f32 %v1161_v34, %v1154_v30  ;;  %v1168_v45 = vmul.f32 %v1161_v34, %v1156_v33  ;;  %v1223_v34 = vld [vmem:[%s3044_s7 + $0x8] sm:$0xff] }
 0x593   : > { %v1167_v49 = vmul.f32 %v1165_v41, %v1155_v38  ;;  %v1169_v50 = vmul.f32 %v1165_v41, %v1157_v39  ;;  %1916 = vmatprep.mubr.msk.f32.mxu0 %vm1362_vm11, %v1223_v34  ;;  %v2278_v38 = vmov 4  }
 0x594   : > { %v1178_v53 = vmul.f32 %v1172_v25, %v1166_v43  ;;  %v1180_v47 = vmul.f32 %v1176_v24, %v1168_v45 }
 0x595   : > { %v1179_v55 = vmul.f32 %v1172_v25, %v1167_v49  ;;  %v1181_v60 = vmul.f32 %v1176_v24, %v1169_v50 }
 0x596   : > { %v1190_v56 = vadd.f32 %v1184_v51, %v1178_v53  ;;  %v1192_v3 = vadd.f32 %v1188_v52, %v1180_v47 }
 0x597   : > { %v1191_v57 = vadd.f32 %v1184_v51, %v1179_v55  ;;  %v1193_v58 = vadd.f32 %v1188_v52, %v1181_v60 }
 0x598   : > { %v1912_v0 = vmul.f32 -1.442695, %v1190_v56  ;;  %v1914_v61 = vmul.f32 -1.442695, %v1192_v3 }
 0x599   : > { %v1913_v8 = vmul.f32 -1.442695, %v1191_v57  ;;  %v1915_v6 = vmul.f32 -1.442695, %v1193_v58 }
 0x59a   : > { %2107 = vpow2.f32 %v1912_v0 }
 0x59b   : > { %2109 = vpow2.f32 %v1913_v8 }
 0x59c   : > { %2111 = vpow2.f32 %v1914_v61 }
 0x59d   : > { %2113 = vpow2.f32 %v1915_v6 }
 0x5a4   : > { %v2108_v48 = vpop.eup %2107 }
 0x5a5   : > { %v2110_v5 = vpop.eup %2109  ;;  %v1206_v1 = vadd.f32 1.0, %v2108_v48 }
 0x5a6   : > { %v2112_v9 = vpop.eup %2111  ;;  %v1207_v2 = vadd.f32 1.0, %v2110_v5 }
 0x5a7   : > { %v2114_v10 = vpop.eup %2113  ;;  %2115 = vrcp.f32 %v1206_v1  ;;  %v1208_v17 = vadd.f32 1.0, %v2112_v9 }
 0x5a8   : > { %2117 = vrcp.f32 %v1207_v2  ;;  %v1209_v18 = vadd.f32 1.0, %v2114_v10 }
 0x5a9   : > { %2119 = vrcp.f32 %v1208_v17 }
 0x5aa   : > { %2121 = vrcp.f32 %v1209_v18 }
 0x5b1   : > { %v2116_v22 = vpop.eup %2115 }
 0x5b2   : > { %v2118_v23 = vpop.eup %2117  ;;  %v2735_v25 = vmul.f32 %v2116_v22, %v1190_v56 }
 0x5b3   : > { %v2120_v27 = vpop.eup %2119  ;;  %v2737_v12 = vmul.f32 %v2118_v23, %v1191_v57 }
 0x5b4   : > { %v2122_v21 = vpop.eup %2121  ;;  %v2739_v24 = vmul.f32 %v2120_v27, %v1192_v3  ;;  %1226 = vrot.lane.b32.xlu1 %v2735_v25, %s2268_s22 }
 0x5b5   : > { %v2743_v28 = vmul.f32 %v2122_v21, %v1193_v58 }
 0x5b6   : > { %1228 = vrot.lane.b32.xlu0 %v2739_v24, %s2268_s22  ;;  %v1984_v30 = vpack.c.bf16 %v2739_v24, %v2735_v25 }
 0x5b7   : > { %v1982_v33 = vpack.c.bf16 %v2743_v28, %v2737_v12 }
 0x5b8   : > { %1242 = vrot.lane.b32.xlu1 %v2735_v25, %s2269_s27 }
 0x5ba   : > { %1244 = vrot.lane.b32.xlu0 %v2739_v24, %s2269_s27 }
 0x5bc   : > { %1258 = vrot.lane.b32.xlu1 %v2735_v25, %s2270_s15 }
 0x5be   : > { %1260 = vrot.lane.b32.xlu0 %v2739_v24, %s2270_s15 }
 0x5c0   : > { %1274 = vrot.lane.b32.xlu1 %v2735_v25, %s2271_s11 }
 0x5c2   : > { %1276 = vrot.lane.b32.xlu0 %v2739_v24, %s2271_s11 }
 0x5c4   : > { %1290 = vrot.lane.b32.xlu1 %v2735_v25, %s2272_s12 }
 0x5c6   : > { %1292 = vrot.lane.b32.xlu0 %v2739_v24, %s2272_s12 }
 0x5c8   : > { %1306 = vrot.lane.b32.xlu1 %v2735_v25, %s2273_s18 }
 0x5ca   : > { %1308 = vrot.lane.b32.xlu0 %v2739_v24, %s2273_s18 }
 0x5cc   : > { %1322 = vrot.lane.b32.xlu1 %v2735_v25, %s2274_s30 }
 0x5ce   : > { %1324 = vrot.lane.b32.xlu0 %v2739_v24, %s2274_s30 }
 0x5d0   : > { %1230 = vrot.lane.b32.xlu1 %v2737_v12, %s2268_s22 }
 0x5d2   : > { %1232 = vrot.lane.b32.xlu0 %v2743_v28, %s2268_s22  ;;  %s2193_s22 = sshll.u32 %s2281_s20, 4  ;;  %s2194_s22 = int_to_ptr.vmem [resolvable:$false] %s2193_s22 }
 0x5d4   : > { %1246 = vrot.lane.b32.xlu1 %v2737_v12, %s2269_s27 }
 0x5d6   : > { %1248 = vrot.lane.b32.xlu0 %v2743_v28, %s2269_s27 }
 0x5d8   : > { %1262 = vrot.lane.b32.xlu1 %v2737_v12, %s2270_s15 }
 0x5da   : > { %1264 = vrot.lane.b32.xlu0 %v2743_v28, %s2270_s15  ;;  %s2195_s15 = scalar_lea.vmem %s2194_s22, 1024 }
 0x5dc   : > { %1278 = vrot.lane.b32.xlu1 %v2737_v12, %s2271_s11 }
 0x5de   : > { %1280 = vrot.lane.b32.xlu0 %v2743_v28, %s2271_s11  ;;  %s379_s11 = sand.u32 1, %s2251_s14  }
 0x5df   : > { %s2995_s26 = scalar_lea.sflag [#allocation4], %s379_s11 }
 0x5e0   : > { %1338 = vrot.lane.b32.xlu1 %v2735_v25, %s2275_s29 }
 0x5e2   : > { %1340 = vrot.lane.b32.xlu0 %v2739_v24, %s2275_s29 }
 0x5e4   : > { %1294 = vrot.lane.b32.xlu1 %v2737_v12, %s2272_s12 }
 0x5e6   : > { %1296 = vrot.lane.b32.xlu0 %v2743_v28, %s2272_s12  ;;  %s1899_s12 = sshll.u32 %s379_s11, 5 }
 0x5e8   : > { %1310 = vrot.lane.b32.xlu1 %v2737_v12, %s2273_s18 }
 0x5ea   : > { %1312 = vrot.lane.b32.xlu0 %v2743_v28, %s2273_s18  ;;  %s381_s18 = scalar_lea.vmem [#allocation7], %s1899_s12 }
 0x5ec   : > { %1326 = vrot.lane.b32.xlu1 %v2737_v12, %s2274_s30 }
 0x5ee   : > { %1328 = vrot.lane.b32.xlu0 %v2743_v28, %s2274_s30  ;;  %s1807_s30 = sshll.u32 %s381_s18, 4  ;;  %s2988_s30 = int_to_ptr.vmem [resolvable:$true] %s1807_s30 }
 0x5ef   : > { %s2189_s28 = scalar_lea.vmem %s2988_s30, 512  ;;  %p2196_p4 = scmp.lt.s32.totalorder %s2988_s30, %s2194_s22 }
 0x5f0   : > { %1342 = vrot.lane.b32.xlu1 %v2737_v12, %s2275_s29  ;;  %p2190_p12 = scmp.ne.s32.totalorder %s2988_s30, %s2189_s28  ;;  %p2197_p7 = scmp.lt.s32.totalorder %s2195_s15, %s2189_s28 }
 0x5f2   : > { %1344 = vrot.lane.b32.xlu0 %v2743_v28, %s2275_s29  ;;  %s1931_s29 = sshll.u32 %s2360_s17, 8  ;;  %p2191_p2 = pnand %p2190_p12, %p3063_p1 }
 0x5f3   : > { %s2993_s21 = scalar_lea.hbm %s3047_s10, %s1931_s29  ;;  %p2198_p8 = por %p2197_p7, %p2196_p4 }
 0x5f4   : > { %1355 = vperm.xlu1 %2092, %v2557_v14   ;;  %p2192_p3 = pneg %p2191_p2 }
 0x5f6   : > { %1359 = vperm.xlu0 %2093, %v2549_v13   ;;  %p2199_p11 = pnand %p2198_p8, %p2192_p3 }
 0x5f8   : > { %2094 = vset.pattern.permute.xlu1 %v2278_v38 }
 0x5f9   : > { %868 = vperm.xlu1 %2094, %v2557_v14  }
 0x5fd   : > { %872 = vperm.xlu1 %2094, %v2549_v13  }
 0x626   : > { %v1227_v39 = vpop.permute.xlu1 %1226 }
 0x628   : > { %v1229_v41 = vpop.permute.xlu0 %1228 }
 0x62a   : > { %v1243_v43 = vpop.permute.xlu1 %1242 }
 0x62c   : > { %v1245_v45 = vpop.permute.xlu0 %1244 }
 0x62e   : > { %v1259_v49 = vpop.permute.xlu1 %1258 }
 0x630   : > { %v1261_v50 = vpop.permute.xlu0 %1260 }
 0x632   : > { %v1275_v51 = vpop.permute.xlu1 %1274 }
 0x634   : > { %v1277_v52 = vpop.permute.xlu0 %1276 }
 0x636   : > { %v2819_v53 = vpop.permute.xlu1 %1290 }
 0x638   : > { %v2821_v47 = vpop.permute.xlu0 %1292 }
 0x63a   : > { %v2823_v55 = vpop.permute.xlu1 %1306 }
 0x63c   : > { %v2825_v60 = vpop.permute.xlu0 %1308 }
 0x63e   : > { %v2827_v56 = vpop.permute.xlu1 %1322 }
 0x640   : > { %v2829_v14 = vpop.permute.xlu0 %1324 }
 0x642   : > { %v1231_v13 = vpop.permute.xlu1 %1230 }
 0x643   : > { %v1234_v3 = vsel %vm639_vm5, %v1227_v39, %v1231_v13  ;;  %v1236_v57 = vsel %vm639_vm5, %v1231_v13, %v1227_v39 }
 0x644   : > { %v1233_v58 = vpop.permute.xlu0 %1232  ;;  %v1238_v0 = vmul.f32 %v1236_v57, %v2592_v35  ;;  %v1239_v61 = vmul.f32 %v1234_v3, %v2595_v36 }
 0x645   : > { %v1235_v8 = vsel %vm639_vm5, %v1229_v41, %v1233_v58  ;;  %v1237_v6 = vsel %vm639_vm5, %v1233_v58, %v1229_v41 }
 0x646   : > { %v1240_v48 = vmul.f32 %v1237_v6, %v2592_v35  ;;  %v1241_v5 = vmul.f32 %v1235_v8, %v2595_v36  ;;  %v1247_v1 = vpop.permute.xlu1 %1246 }
 0x647   : > { %v1250_v9 = vsel %vm656_vm2, %v1243_v43, %v1247_v1  ;;  %v1252_v2 = vsel %vm656_vm2, %v1247_v1, %v1243_v43 }
 0x648   : > { %v1968_v10 = vpack.c.bf16 %v1240_v48, %v1238_v0  ;;  %v1249_v17 = vpop.permute.xlu0 %1248  ;;  %v1254_v18 = vmul.f32 %v1252_v2, %v2576_v26  ;;  %v1255_v22 = vmul.f32 %v1250_v9, %v2581_v29  ;;  %v1966_v23 = vpack.c.bf16 %v1241_v5, %v1239_v61 }
 0x649   : > { %v1251_v27 = vsel %vm656_vm2, %v1245_v45, %v1249_v17  ;;  %v1253_v35 = vsel %vm656_vm2, %v1249_v17, %v1245_v45 }
 0x64a   : > { %v1256_v36 = vmul.f32 %v1253_v35, %v2576_v26  ;;  %v1257_v21 = vmul.f32 %v1251_v27, %v2581_v29  ;;  %1967 = vmatprep.subr.bf16.mxu0 %v1966_v23  ;;  %v1263_v34 = vpop.permute.xlu1 %1262 }
 0x64b   : > { %1969 = vmatpush1.bf16.msra.mxu0 %v1968_v10  ;;  %v1266_v38 = vsel %vm673_vm4, %v1259_v49, %v1263_v34  ;;  %v1268_v39 = vsel %vm673_vm4, %v1263_v34, %v1259_v49 }
 0x64c   : > { %v1972_v41 = vpack.c.bf16 %v1256_v36, %v1254_v18  ;;  %v1265_v43 = vpop.permute.xlu0 %1264  ;;  %v1270_v13 = vmul.f32 %v1268_v39, %v2619_v54  ;;  %v1271_v3 = vmul.f32 %v1266_v38, %v2597_v37  ;;  %v1970_v45 = vpack.c.bf16 %v1257_v21, %v1255_v22 }
 0x64d   : > { %v1267_v26 = vsel %vm673_vm4, %v1261_v50, %v1265_v43  ;;  %v1269_v29 = vsel %vm673_vm4, %v1265_v43, %v1261_v50 }
 0x64e   : > { %v1272_v57 = vmul.f32 %v1269_v29, %v2619_v54  ;;  %v1273_v58 = vmul.f32 %v1267_v26, %v2597_v37  ;;  %1971 = vmatprep.subr.bf16.mxu0 %v1970_v45  ;;  %v1279_v0 = vpop.permute.xlu1 %1278 }
 0x64f   : > { %1973 = vmatpush1.bf16.msra.mxu0 %v1972_v41  ;;  %v1282_v49 = vsel %vm690_vm3, %v1275_v51, %v1279_v0  ;;  %v1284_v61 = vsel %vm690_vm3, %v1279_v0, %v1275_v51 }
 0x650   : > { %v1976_v8 = vpack.c.bf16 %v1272_v57, %v1270_v13  ;;  %v1281_v6 = vpop.permute.xlu0 %1280  ;;  %v1286_v48 = vmul.f32 %v1284_v61, %v2602_v40  ;;  %v1287_v5 = vmul.f32 %v1282_v49, %v2586_v31  ;;  %v1974_v50 = vpack.c.bf16 %v1273_v58, %v1271_v3 }
 0x651   : > { %v1283_v54 = vsel %vm690_vm3, %v1277_v52, %v1281_v6  ;;  %v1285_v37 = vsel %vm690_vm3, %v1281_v6, %v1277_v52 }
 0x652   : > { %v1288_v1 = vmul.f32 %v1285_v37, %v2602_v40  ;;  %v1289_v9 = vmul.f32 %v1283_v54, %v2586_v31  ;;  %1975 = vmatprep.subr.bf16.mxu0 %v1974_v50  ;;  %v1339_v2 = vpop.permute.xlu1 %1338  ;;  %v1222_v54 = vld [vmem:[%s3044_s7] sm:$0xff]  ;;  %v1225_v37 = vld [vmem:[%s3044_s7 + $0x18] sm:$0xff] }
 0x653   : > { %1977 = vmatpush1.bf16.msra.mxu0 %v1976_v8 }
 0x654   : > { %v1980_v51 = vpack.c.bf16 %v1288_v1, %v1286_v48  ;;  %v1341_v10 = vpop.permute.xlu0 %1340  ;;  %v1978_v17 = vpack.c.bf16 %v1289_v9, %v1287_v5 }
 0x656   : > { %1979 = vmatprep.subr.bf16.mxu0 %v1978_v17  ;;  %v1295_v18 = vpop.permute.xlu1 %1294 }
 0x657   : > { %1981 = vmatpush1.bf16.msra.mxu0 %v1980_v51  ;;  %v1298_v22 = vsel %vm707_vm6, %v2819_v53, %v1295_v18  ;;  %v1300_v52 = vsel %vm707_vm6, %v1295_v18, %v2819_v53 }
 0x658   : > { %v1297_v40 = vpop.permute.xlu0 %1296  ;;  %1983 = vmatprep.subr.bf16.mxu0 %v1982_v33  ;;  %v1302_v31 = vmul.f32 %v1298_v22, %v2625_v62  ;;  %v1303_v23 = vmul.f32 %v1300_v52, %v2605_v42  ;;  %v2279_v52 = vmov 0.0|0.0  }
 0x659   : > { %v1299_v27 = vsel %vm707_vm6, %v2821_v47, %v1297_v40  ;;  %v1301_v35 = vsel %vm707_vm6, %v1297_v40, %v2821_v47  ;;  %2002 = vmatprep.subr.bf16.mxu1 %v2279_v52 }
 0x65a   : > { %v1304_v36 = vmul.f32 %v1299_v27, %v2625_v62  ;;  %v1305_v53 = vmul.f32 %v1301_v35, %v2605_v42  ;;  %v1311_v21 = vpop.permute.xlu1 %1310 }
 0x65b   : > { %1985 = vmatpush1.bf16.msra.mxu0 %v1984_v30  ;;  %v1314_v12 = vsel %vm724_vm7, %v2823_v55, %v1311_v21  ;;  %v1316_v28 = vsel %vm724_vm7, %v1311_v21, %v2823_v55  ;;  %v1523_v21 = vld [vmem:[%s3045_s8] sm:$0x3] }
 0x65c   : > { %v1988_v33 = vpack.c.bf16 %v1304_v36, %v1302_v31  ;;  %v1313_v34 = vpop.permute.xlu0 %1312  ;;  %v1318_v47 = vmul.f32 %v1314_v12, %v2637_v15  ;;  %v1319_v62 = vmul.f32 %v1316_v28, %v2639_v16  ;;  %v1986_v42 = vpack.c.bf16 %v1305_v53, %v1303_v23  ;;  %v1598_v12 = vld [vmem:[%s3046_s9] sm:$0xff] }
 0x65d   : > { %v1315_v25 = vsel %vm724_vm7, %v2825_v60, %v1313_v34  ;;  %v1317_v24 = vsel %vm724_vm7, %v1313_v34, %v2825_v60 }
 0x65e   : > { %v1320_v30 = vmul.f32 %v1315_v25, %v2637_v15  ;;  %v1321_v38 = vmul.f32 %v1317_v24, %v2639_v16  ;;  %1987 = vmatprep.subr.bf16.mxu0 %v1986_v42  ;;  %v1327_v55 = vpop.permute.xlu1 %1326  ;;  %v2132_v42 = vld [vmem:[#allocation2] sm:$0xff] }
 0x65f   : > { %1989 = vmatpush1.bf16.msra.mxu0 %v1988_v33  ;;  %v1330_v39 = vsel %vm741_vm8, %v2827_v56, %v1327_v55  ;;  %v1332_v41 = vsel %vm741_vm8, %v1327_v55, %v2827_v56 }
 0x660   : > { %v1992_v43 = vpack.c.bf16 %v1320_v30, %v1318_v47  ;;  %v1329_v13 = vpop.permute.xlu0 %1328  ;;  %v1334_v3 = vmul.f32 %v1330_v39, %v2643_v46  ;;  %v1335_v60 = vmul.f32 %v1332_v41, %v2645_v20  ;;  %v1990_v15 = vpack.c.bf16 %v1321_v38, %v1319_v62  ;;  %v1599_v47 = vld [vmem:[%s3046_s9 + $0x8] sm:$0xff] }
 0x661   : > { %v1331_v16 = vsel %vm741_vm8, %v2829_v14, %v1329_v13  ;;  %v1333_v45 = vsel %vm741_vm8, %v1329_v13, %v2829_v14  ;;  %v2131_v62 = vld [vmem:[#allocation2 + $0x8] sm:$0xff] }
 0x662   : > { %v1336_v26 = vmul.f32 %v1331_v16, %v2643_v46  ;;  %v1337_v29 = vmul.f32 %v1333_v45, %v2645_v20  ;;  %1991 = vmatprep.subr.bf16.mxu0 %v1990_v15  ;;  %v1343_v56 = vpop.permute.xlu1 %1342 }
 0x663   : > { %1993 = vmatpush1.bf16.msra.mxu0 %v1992_v43  ;;  %v1346_v57 = vsel %vm758_vm9, %v1339_v2, %v1343_v56  ;;  %v1348_v58 = vsel %vm758_vm9, %v1343_v56, %v1339_v2 }
 0x664   : > { %v1996_v0 = vpack.c.bf16 %v1336_v26, %v1334_v3  ;;  %v1345_v49 = vpop.permute.xlu0 %1344  ;;  %v1350_v61 = vmul.f32 %v2671_v44, %v1346_v57  ;;  %v1351_v8 = vmul.f32 %v2664_v11, %v1348_v58  ;;  %v1994_v14 = vpack.c.bf16 %v1337_v29, %v1335_v60 }
 0x665   : > { %v1347_v46 = vsel %vm758_vm9, %v1341_v10, %v1345_v49  ;;  %v1349_v20 = vsel %vm758_vm9, %v1345_v49, %v1341_v10 }
 0x666   : > { %v1352_v6 = vmul.f32 %v2671_v44, %v1347_v46  ;;  %v1353_v48 = vmul.f32 %v2664_v11, %v1349_v20  ;;  %1995 = vmatprep.subr.bf16.mxu0 %v1994_v14 }
 0x667   : > { %1997 = vmatpush1.bf16.msra.mxu0 %v1996_v0 }
 0x668   : > { %v2000_v5 = vpack.c.bf16 %v1352_v6, %v1350_v61  ;;  %v1998_v50 = vpack.c.bf16 %v1353_v48, %v1351_v8 }
 0x66a   : > { %1999 = vmatprep.subr.bf16.mxu0 %v1998_v50 }
 0x66b   : > { %2001 = vmatpush1.bf16.msra.mxu0 %v2000_v5 }
 0x66e   : > { %1434 = vmatmul.mubr.f32.vlgmr.msra.gmra.mrb[8].mxu0 %v1222_v54 }
 0x66f   : > { %1917 = vmatprep.mubr.msk.f32.mxu0 %vm1362_vm11, %v1225_v37 }
 0x672   : > { %1440 = vmatmul.mubr.f32.gmra.mrb[10].mxu0 %v1224_v19 }
 0x673   : > { %v1356_v44 = vpop.permute.xlu1 %1355 }
 0x675   : > { %v1360_v51 = vpop.permute.xlu0 %1359 }
 0x678   : > { %v869_v60 = vpop.permute.xlu1 %868 }
 0x679   : > { %v948_v16 = vadd.f32 %v2715_v59, %v869_v60  ;;  %v950_v29 = vadd.f32 %v2717_v63, %v869_v60 }
 0x67c   : > { %v873_v56 = vpop.permute.xlu1 %872 }
 0x67d   : > { %v954_v49 = vadd.f32 %v2719_v4, %v873_v56  ;;  %v956_v8 = vadd.f32 %v2721_v7, %v873_v56 }
 0x741   : > { %v1435_v11 = vpop.f32.mrb[8].mxu0 }
 0x742   : > { %v1437_v1 = vpop.f32.mrb[9].mxu0  ;;  %v1436_v2 = vadd.f32 %v1435_v11, %v1356_v44 }
 0x743   : > { %v2955_v9 = vadd.f32 %v1437_v1, %v1356_v44 }
 0x745   : > { %v1441_v10 = vpop.f32.mrb[10].mxu0  ;;  %1510 = vmatprep.mubr.f32.mxu1 %v2955_v9 }
 0x746   : > { %v1443_v17 = vpop.f32.mrb[11].mxu0  ;;  %1511 = vmatmul.mubr.f32.vlgmr.msra.gmra.mrb[8].mxu1 %v1436_v2  ;;  %v2960_v22 = vadd.f32 %v1441_v10, %v1360_v51 }
 0x747   : > { %v2958_v18 = vadd.f32 %v1443_v17, %v1360_v51 }
 0x749   : > { %1515 = vmatprep.mubr.f32.mxu1 %v2958_v18 }
 0x74a   : > { %1516 = vmatmul.mubr.f32.gmra.mrb[10].mxu1 %v2960_v22 }
 0x74b   : > { %1942 = vmatprep.mubr.msk.f32.mxu1 %vm2280_vm12, %v2265_v32 }
 0x819   : > { %v1512_v40 = vpop.f32.mrb[8].mxu1 }
 0x81a   : > { %v1514_v31 = vpop.f32.mrb[9].mxu1  ;;  %v1521_v27 = vmul.f32 0.00390625, %v1512_v40 }
 0x81d   : > { %v1517_v23 = vpop.f32.mrb[10].mxu1 }
 0x81e   : > { %v1522_v35 = vmul.f32 0.00390625, %v1517_v23  ;;  %v1519_v36 = vpop.f32.mrb[11].mxu1 }
 0x820   : > { %v2003_v53 = vpack.c.bf16 %v1522_v35, %v1521_v27 }
 0x822   : > { %2004 = vmatpush3.bf16.msra.mxu1 %v2003_v53 }
 0x825   : > { %1943 = vmatmul.mubr.msk.f32.vlgmr.msra.gmra.mrb[12].mxu1 %vm1362_vm11, %v1523_v21 }
 0x826   : > { %1947 = vmatprep.mubr.msk.f32.mxu1 %vm1600_vm13, %v1598_v12 }
 0x8f8   : > { %v1593_v28 = vpop.f32.mrb[12].mxu1 }
 0x8f9   : > { %v1597_v33 = vmax.f32 %v1593_v28, 0.0  ;;  %v1944_v34 = vpop.f32.mrb[13].mxu1 }
 0x8fb   : > { %1945 = vmatprep.subr.msk.mxu1 %vm1607_vm14, %v1597_v33 }
 0x8fc   : > { %1946 = vmatpush3.msk.msra.mxu1 %vm1607_vm14, %v1597_v33 }
 0x8fd   : > { %1948 = vmatmul.mubr.msk.f32.vlgmr.msra.gmra.mrb[14].mxu1 %vm1600_vm13, %v1599_v47  ;;  %1704 = vmatprep.subr.mxu1 %v2131_v62 }
 0x8fe   : > { %1705 = vmatpush1.msra.mxu1 %v2132_v42  ;;  %1768 = vmatprep.mubr.f32.mxu1 %v2265_v32 }
 0x9d0   : > { %v1949_v25 = vpop.f32.mrb[14].mxu1 }
 0x9d1   : > { %v1923_v24 = vmul.f32 -1.442695, %v1949_v25  ;;  %v1677_v30 = vpop.f32.mrb[15].mxu1 }
 0x9d2   : > { %v1922_v38 = vmul.f32 -1.442695, %v1677_v30 }
 0x9d3   : > { %2123 = vpow2.f32 %v1923_v24 }
 0x9d4   : > { %2125 = vpow2.f32 %v1922_v38 }
 0x9dd   : > { %v2124_v55 = vpop.eup %2123 }
 0x9de   : > { %v2126_v39 = vpop.eup %2125  ;;  %v1693_v43 = vadd.f32 1.0, %v2124_v55 }
 0x9df   : > { %v1692_v41 = vadd.f32 1.0, %v2126_v39 }
 0x9e1   : > { %2127 = vrcp.f32 %v1692_v41 }
 0x9e2   : > { %2129 = vrcp.f32 %v1693_v43 }
 0x9eb   : > { %v2128_v13 = vpop.eup %2127 }
 0x9ec   : > { %1924 = vmatmul.mubr.msk.f32.vlgmr.msra.gmra.mrb[16].mxu1 %vm509_vm1, %v2128_v13  ;;  %v2130_v3 = vpop.eup %2129 }
 0x9ed   : > { %1774 = vmatprep.mubr.f32.mxu1 %v2265_v32 }
 0x9f0   : > { %1925 = vmatmul.mubr.msk.f32.gmra.mrb[18].mxu1 %vm509_vm1, %v2130_v3 }
 0xabf   : > { %v1770_v15 = vpop.f32.mrb[16].mxu1 }
 0xac0   : > { %v1781_v45 = vmul.f32 %v1770_v15, %v1436_v2  ;;  %v1772_v26 = vpop.f32.mrb[17].mxu1 }
 0xac1   : > { %v1782_v57 = vmul.f32 %v1772_v26, %v2955_v9 }
 0xac2   : > { %v1785_v58 = vadd.f32 %v1781_v45, %v948_v16 }
 0xac3   : > { %v1786_v32 = vadd.f32 %v1782_v57, %v950_v29  ;;  %v1776_v0 = vpop.f32.mrb[18].mxu1 }
 0xac4   : > { %1789 = vst [vmem:[%s381_s18] sm:$0xff] %v1785_v58  ;;  %v1783_v61 = vmul.f32 %v1776_v0, %v2960_v22  ;;  %v1778_v59 = vpop.f32.mrb[19].mxu1 }
 0xac5   : > { %1790 = vst [vmem:[%s381_s18 + $0x8] sm:$0xff] %v1786_v32  ;;  %v1784_v63 = vmul.f32 %v1778_v59, %v2958_v18 }
 0xac6   : > { %v1787_v14 = vadd.f32 %v1783_v61, %v954_v49 }
 0xac7   : > { %v1788_v4 = vadd.f32 %v1784_v63, %v956_v8 }
 0xac8   : > { %1791 = vst [vmem:[%s381_s18 + $0x10] sm:$0xff] %v1787_v14 }
 0xac9   : > { %1792 = vst [vmem:[%s381_s18 + $0x18] sm:$0xff] %v1788_v4 }
 0xaca   : > { %2202 = shalt.err (!%p2199_p11)
}
 0xacb   : > { %s2203_s11 = scalar_lea.hbm %s2993_s21, 512  ;;  %s2207_s29 = scalar_lea.hbm %s3047_s10, 1024 }
 0xacc   : > { %p2204_p13 = scmp.ne.s32.totalorder %s2993_s21, %s2203_s11  ;;  %p2208_p5 = scmp.lt.u32.totalorder %s2993_s21, %s3047_s10 }
 0xacd   : > { %p2209_p9 = scmp.lt.u32.totalorder %s2207_s29, %s2203_s11  ;;  %p2211_p12 = scmp.lt.u32.totalorder %s2203_s11, %s2993_s21 }
 0xace   : > { %p2205_p0 = pnand %p2204_p13, %p3063_p1 }
 0xacf   : > { %p2210_p10 = por %p2209_p9, %p2208_p5 }
 0xad0   : > { %p2206_p6 = pneg %p2205_p0 }
 0xad1   : > { %p2212_p2 = por %p2211_p12, %p2210_p10 }
 0xad3   : > { %p2213_p3 = pnand %p2212_p2, %p2206_p6 }
 0xad5   : > { %2216 = shalt.err (!%p2213_p3)
}
 0xad6   : > { %s2282_s28 = smov 256   ;;  %s2283_s20 = smov 512  }
 0xad7   : > { %2013 = dma.vmem_to_hbm [thread:$0]  (%p3063_p1), %s2988_s30, 512, %s2993_s21, %s2995_s26, %s2282_s28, %s2283_s20, %s2269_s27  }
 0xad8 PF: > { %p2030_p4 = scmp.ge.s32.totalorder %s2259_s16, 2  ;;  %s1822_s22 = sand.u32 1, %s2247_s13  }
 0xad9   : > { %p3064_p7 = scmp.ne.s32.totalorder %s3055_s24, 0  ;;  %s1823_s15 = scalar_lea.sflag [#allocation4], %s1822_s22 }
 0xadb   : > { %p2023_p8 = pnand %p2030_p4, %p3064_p7 }
 0xadd   : > { %2242 = dma.done.wait (!%p2023_p8), %s1823_s15, 512  }
 0xade   : > { %2244 = vsyncadd (!%p2023_p8), %s1823_s15, 4294966784  ;;  %s3065_s11 = sld [smem:[#allocation11_spill]]  ;;  %s3066_s15 = sld [smem:[#allocation12_spill]] }
 0xadf   : > { %p22_p11 = scmp.ge.s32.totalorder %s2364_s19, 4   ;;  %s3067_s13 = smov %s2251_s14 }
 0xae0   : > { %s3069_s16 = smov %s2364_s19 }
 0xae1   :  { %24 = sbr.rel (!%p22_p11) target bundleno = 5 (0x5), region = 104 }
 0xae4   : > { %s3068_s14 = smov %s3065_s11 }
 0xae8   :  { %1828 = vsyncpa [#allocation3], 1 }
 0xae9   :  { %1830 = vsyncpa [#allocation3 + $0x1], 1 }
 0xaea   :  { %1831 = vsyncpa [#allocation6], 1 }
 0xaeb   :  { %1832 = vsyncpa [#allocation4], 1 }
 0xaec   :  { %1834 = vsyncpa [#allocation4 + $0x1], 1 }

</bundles_post_ra>
